<compile_context>
chip_gen: v5e
topology: v5e:2x2
jax: 0.10.0
libtpu: 0.0.40
codegen_flags: <defaults>
</compile_context>

<pallas_src>
import functools
import math

import jax
import jax.numpy as jnp
from jax.experimental import pallas as pl
from jax.experimental.pallas import tpu as pltpu


def _ensemble_kernel(img_ref, tab_ref, wimg_ref, wtab_ref, b_ref, out_ref,
                     *, n_members, n_classes, member_lanes):
    """One batch tile: fused member matmul + confidence-weighted softmax avg.

    img_ref:  (bb, F_img)        image features, native dtype
    tab_ref:  (bb, T)            tabular features, native dtype
    wimg_ref: (F_img, M*Cp)      fused image weights (Cp = 128-lane window)
    wtab_ref: (T, M*Cp)          fused tabular weights
    b_ref:    (1, M*Cp)          fused biases (pad lanes = -1e30), f32
    out_ref:  (bb, Cp)           lane-dense ensemble probabilities (f32)
    """
    # Cast activations to the weight dtype (bf16 by default) in-VMEM; the HBM
    # stream keeps the caller's dtype, the cast is a cheap VPU op.
    x_img = img_ref[...].astype(wimg_ref.dtype)
    x_tab = tab_ref[...].astype(wtab_ref.dtype)

    # One fused MXU pass per input stream gives every member's logits at once.
    logits_all = (
        jnp.dot(x_img, wimg_ref[...], preferred_element_type=jnp.float32)
        + jnp.dot(x_tab, wtab_ref[...], preferred_element_type=jnp.float32)
        + b_ref[...])

    bb = logits_all.shape[0]
    if member_lanes > n_classes:
        lane_idx = jax.lax.broadcasted_iota(jnp.int32, (bb, member_lanes), 1)
        real_lane = lane_idx < n_classes
    else:
        real_lane = None

    acc = None       # sum_m p_m * inv_entropy_m
    inv_sum = None   # sum_m inv_entropy_m
    for m in range(n_members):
        # 128-aligned static lane window -> clean vregs, unmasked reductions.
        logits = logits_all[:, m * member_lanes:(m + 1) * member_lanes]

        # softmax(dim=-1); pad lanes carry bias -1e30 so exp() underflows to 0
        # and they drop out of both max and the denominator.
        mx = jnp.max(logits, axis=-1, keepdims=True)
        e = jnp.exp(logits - mx)
        p = e / jnp.sum(e, axis=-1, keepdims=True)

        # torch: p[p == 0] += 1e-7 — applied only to the real class lanes so
        # pad lanes keep exact zeros (zero contribution to entropy/output).
        zero = p == 0.0
        if real_lane is not None:
            zero = jnp.logical_and(zero, real_lane)
        p = jnp.where(zero, jnp.float32(1e-7), p)

        # entropy(p) = sum(p * -log(p + 1e-14)); pad lanes contribute exactly 0.
        # (Kept in the reference's form; an algebraic log(Z)-based variant would
        #  cut EUP logs but this kernel is HBM-bound, not EUP-bound.)
        ent = jnp.sum(p * (-jnp.log(p + 1e-14)), axis=-1, keepdims=True)

        # 1/entropy on the EUP; the approx error largely cancels in the ratio.
        inv_ent = pl.reciprocal(ent, approx=True)

        contrib = p * inv_ent
        acc = contrib if acc is None else acc + contrib
        inv_sum = inv_ent if inv_sum is None else inv_sum + inv_ent

    # Final normalization: one EXACT divide per row, then a broadcast multiply.
    out_ref[...] = (acc * (1.0 / inv_sum)).astype(out_ref.dtype)


def _pick_batch_tiling(batch, cap=512):
    """Choose (batch_block, padded_batch).

    Prefers the largest multiple-of-8 divisor of `batch` that is <= cap and
    yields >= 2 grid steps (so v7x's two TensorCores both get rows).  Small
    batches fall back to a single full tile (block == full dim is legal);
    large awkward batches are padded to a multiple of 256 and sliced after.
    """
    limit = min(cap, batch // 2)
    best = 0
    for cand in range(8, limit + 1, 8):
        if batch % cand == 0:
            best = cand
    if best:
        return best, batch
    if batch <= cap:
        return batch, batch
    padded = ((batch + 255) // 256) * 256
    return 256, padded


def ensemble_forward(img, tabular, W, b, *, matmul_dtype=jnp.bfloat16,
                     batch_block=None):
    """Confidence-weighted average-softmax ensemble.

    img:     (B, C_img, H, W)    (the module casts to float; any input dtype is
                                  cast in-kernel, so HBM is read exactly once)
    tabular: (B, T)
    W:       (M, F, NUM_CLASSES) stacked member weights, F = C_img*H*W + T
    b:       (M, NUM_CLASSES)    stacked member biases
    returns: (B, NUM_CLASSES) float32
    matmul_dtype: MXU input dtype (bf16 default on v5e/v6e/v7x; f32 acc always).
    """
    B = img.shape[0]
    F_img = math.prod(img.shape[1:])
    img2 = img.reshape(B, F_img)                 # metadata-only reshape
    T = tabular.shape[1]
    M, F, C = W.shape
    assert F == F_img + T, (F, F_img, T)

    # Lane-dense member windows: each member owns Cp = ceil(C/128)*128 lanes.
    Cp = ((C + 127) // 128) * 128

    # Fuse + split weights once (tiny, one-time): (M,F,C) -> (F, M, Cp) ->
    # image part (F_img, M*Cp) and tabular part (T, M*Cp).  Pad lanes are zero
    # in W; pad biases are -1e30 so their softmax probability is exactly 0.
    Wt = jnp.transpose(W.astype(jnp.float32), (1, 0, 2))            # (F, M, C)
    Wt = jnp.pad(Wt, ((0, 0), (0, 0), (0, Cp - C))).astype(matmul_dtype)
    W_img = Wt[:F_img].reshape(F_img, M * Cp)
    W_tab = Wt[F_img:].reshape(T, M * Cp)
    b_fused = jnp.pad(b.astype(jnp.float32), ((0, 0), (0, Cp - C)),
                      constant_values=-1e30).reshape(1, M * Cp)

    # Batch tiling (divisor-safe; >=2 grid steps when possible).
    if batch_block is None:
        batch_block, B_pad = _pick_batch_tiling(B)
    else:
        batch_block = min(int(batch_block), B)
        if batch_block < B and batch_block % 8 != 0:
            batch_block = max(8, (batch_block // 8) * 8)
        B_pad = pl.cdiv(B, batch_block) * batch_block
    if B_pad != B:
        img2 = jnp.pad(img2, ((0, B_pad - B), (0, 0)))
        tabular = jnp.pad(tabular, ((0, B_pad - B), (0, 0)))
    grid = (B_pad // batch_block,)

    # VMEM budget from the actual tiles (double-buffered) + compute headroom;
    # stays well under v7x's 64 MiB physical VMEM at the 512-row cap.
    isz = lambda d: jnp.dtype(d).itemsize
    pipeline_bytes = 2 * (
        batch_block * F_img * isz(img2.dtype)
        + batch_block * T * isz(tabular.dtype)
        + F_img * M * Cp * isz(matmul_dtype)
        + T * M * Cp * isz(matmul_dtype)
        + M * Cp * 4
        + batch_block * Cp * 4)
    compute_bytes = batch_block * (M + 8) * Cp * 4
    vmem_limit = int(min(pipeline_bytes + compute_bytes + (8 << 20), 64 << 20))

    kernel = functools.partial(_ensemble_kernel, n_members=M, n_classes=C,
                               member_lanes=Cp)

    out = pl.pallas_call(
        kernel,
        out_shape=jax.ShapeDtypeStruct((B_pad, Cp), jnp.float32),
        grid_spec=pltpu.PrefetchScalarGridSpec(
            num_scalar_prefetch=0,
            grid=grid,
            in_specs=[
                pl.BlockSpec((batch_block, F_img), lambda i: (i, 0)),  # img
                pl.BlockSpec((batch_block, T), lambda i: (i, 0)),      # tabular
                # Grid-constant blocks: Pallas keeps them resident (DMA'd once).
                pl.BlockSpec((F_img, M * Cp), lambda i: (0, 0)),       # W_img
                pl.BlockSpec((T, M * Cp), lambda i: (0, 0)),           # W_tab
                pl.BlockSpec((1, M * Cp), lambda i: (0, 0)),           # bias
            ],
            out_specs=pl.BlockSpec((batch_block, Cp), lambda i: (i, 0)),
        ),
        compiler_params=pltpu.CompilerParams(
            dimension_semantics=("parallel",),
            vmem_limit_bytes=vmem_limit),
    )(img2, tabular, W_img, W_tab, b_fused)

    return out[:B, :C]


def _reference_forward(img, tabular, W, b, matmul_dtype=jnp.float32):
    """Pure-JAX reference mirroring the PyTorch module semantics.

    `matmul_dtype` rounds the matmul inputs the same way the kernel's MXU path
    does (bf16 in / f32 accumulate); everything else is exact f32.
    """
    img = img.astype(jnp.float32)
    B = img.shape[0]
    feats = jnp.concatenate(
        [img.reshape(B, -1), tabular.astype(jnp.float32)], axis=-1)
    feats = feats.astype(matmul_dtype).astype(jnp.float32)
    Wf = W.astype(matmul_dtype).astype(jnp.float32)
    bf = b.astype(jnp.float32)
    probs = []
    for m in range(W.shape[0]):
        logits = feats @ Wf[m] + bf[m]
        p = jax.nn.softmax(logits, axis=-1)
        p = jnp.where(p == 0.0, 1e-7, p)
        probs.append(p)
    ents = [jnp.sum(p * (-jnp.log(p + 1e-14)), axis=-1, keepdims=True)
            for p in probs]
    inv = 1.0 / jnp.concatenate(ents, axis=-1)
    wts = inv / jnp.sum(inv, axis=1, keepdims=True)
    out = probs[0] * wts[:, 0:1]
    for i in range(1, len(probs)):
        out = out + probs[i] * wts[:, i:i + 1]
    return out


if __name__ == "__main__":
    # Small shapes consistent with the (img, tabular) multimodal input.
    B, C_IMG, H, WID = 2, 4, 16, 16
    T = 8                     # tabular features
    NUM_CLASSES = 10
    M = 3                     # ensemble members
    F = C_IMG * H * WID + T   # 1032 (img part 1024 is already lane-aligned)

    key = jax.random.PRNGKey(0)
    k_img, k_tab, k_w, k_b = jax.random.split(key, 4)

    img = jax.random.normal(k_img, (B, C_IMG, H, WID), dtype=jnp.float32)
    tabular = jax.random.normal(k_tab, (B, T), dtype=jnp.float32)
    W = 0.05 * jax.random.normal(k_w, (M, F, NUM_CLASSES), dtype=jnp.float32)
    b = 0.1 * jax.random.normal(k_b, (M, NUM_CLASSES), dtype=jnp.float32)

    out = jax.block_until_ready(ensemble_forward(img, tabular, W, b))
    ref = _reference_forward(img, tabular, W, b, matmul_dtype=jnp.bfloat16)

    assert out.shape == (B, NUM_CLASSES)
    # Tolerance covers the approx (EUP) reciprocal used for 1/entropy; the
    # matmul path (bf16 in / f32 acc) is mirrored in the reference and the
    # final normalization is an exact divide.
    assert jnp.allclose(out, ref, atol=2e-3, rtol=2e-3), (out, ref)

    print("KERNEL_OK")
</pallas_src>

<mosaic_0001>
module attributes {stable_mosaic.version = 11 : i64} {
  func.func @_ensemble_kernel(%arg0: i32, %arg1: memref<2x1024xf32, #tpu.memory_space<vmem>>, %arg2: memref<2x8xf32, #tpu.memory_space<vmem>>, %arg3: memref<1024x384xbf16, #tpu.memory_space<vmem>>, %arg4: memref<8x384xbf16, #tpu.memory_space<vmem>>, %arg5: memref<1x384xf32, #tpu.memory_space<vmem>>, %arg6: memref<2x128xf32, #tpu.memory_space<vmem>>) attributes {dimension_semantics = [#tpu.dimension_semantics<parallel>], iteration_bounds = array<i64: 1>, scalar_prefetch = 0 : i64, scratch_operands = 0 : i64, tpu.core_type = #tpu.core_type<tc>, window_params = [{transform_indices = @transform_0, window_bounds = array<i64: 2, 1024>}, {transform_indices = @transform_1, window_bounds = array<i64: 2, 8>}, {pipeline_mode = #tpu.pipeline_mode<synchronous>, transform_indices = @transform_2, window_bounds = array<i64: 1024, 384>}, {pipeline_mode = #tpu.pipeline_mode<synchronous>, transform_indices = @transform_3, window_bounds = array<i64: 8, 384>}, {pipeline_mode = #tpu.pipeline_mode<synchronous>, transform_indices = @transform_4, window_bounds = array<i64: 1, 384>}, {transform_indices = @transform_5, window_bounds = array<i64: 2, 128>}]} {
    %c0 = arith.constant 0 : index
    %c0_0 = arith.constant 0 : index
    %0 = vector.load %arg1[%c0, %c0_0] : memref<2x1024xf32, #tpu.memory_space<vmem>>, vector<2x1024xf32>
    %1 = arith.truncf %0 : vector<2x1024xf32> to vector<2x1024xbf16>
    %c0_1 = arith.constant 0 : index
    %c0_2 = arith.constant 0 : index
    %2 = vector.load %arg2[%c0_1, %c0_2] : memref<2x8xf32, #tpu.memory_space<vmem>>, vector<2x8xf32>
    %3 = arith.truncf %2 : vector<2x8xf32> to vector<2x8xbf16>
    %c0_3 = arith.constant 0 : index
    %c0_4 = arith.constant 0 : index
    %4 = vector.load %arg3[%c0_3, %c0_4] : memref<1024x384xbf16, #tpu.memory_space<vmem>>, vector<1024x384xbf16>
    %cst = arith.constant dense<0.000000e+00> : vector<2x384xf32>
    %5 = tpu.matmul %1, %4, %cst {dimension_numbers = #tpu.dot_dimension_numbers<[1], [0], [0], [1], [0, 0, 1, 1], [], []>} : vector<2x1024xbf16>, vector<1024x384xbf16>, vector<2x384xf32> -> vector<2x384xf32>
    %c0_5 = arith.constant 0 : index
    %c0_6 = arith.constant 0 : index
    %6 = vector.load %arg4[%c0_5, %c0_6] : memref<8x384xbf16, #tpu.memory_space<vmem>>, vector<8x384xbf16>
    %cst_7 = arith.constant dense<0.000000e+00> : vector<2x384xf32>
    %7 = tpu.matmul %3, %6, %cst_7 {dimension_numbers = #tpu.dot_dimension_numbers<[1], [0], [0], [1], [0, 0, 1, 1], [], []>} : vector<2x8xbf16>, vector<8x384xbf16>, vector<2x384xf32> -> vector<2x384xf32>
    %8 = arith.addf %5, %7 : vector<2x384xf32>
    %c0_8 = arith.constant 0 : index
    %c0_9 = arith.constant 0 : index
    %9 = vector.load %arg5[%c0_8, %c0_9] : memref<1x384xf32, #tpu.memory_space<vmem>>, vector<1x384xf32>
    %10 = vector.broadcast %9 : vector<1x384xf32> to vector<2x384xf32>
    %11 = arith.addf %8, %10 : vector<2x384xf32>
    %12 = tpu.iota {dimensions = array<i32: 1>} : vector<2x128xi32>
    %c10_i32 = arith.constant 10 : i32
    %13 = vector.broadcast %c10_i32 : i32 to vector<2x128xi32>
    %14 = arith.cmpi slt, %12, %13 : vector<2x128xi32>
    %15 = vector.extract_strided_slice %11 {offsets = [0, 0], sizes = [2, 128], strides = [1, 1]} : vector<2x384xf32> to vector<2x128xf32>
    %cst_10 = arith.constant dense<0xFF800000> : vector<2xf32>
    %16 = vector.multi_reduction <maximumf>, %15, %cst_10 [1] : vector<2x128xf32> to vector<2xf32>
    %17 = vector.shape_cast %16 : vector<2xf32> to vector<2x1xf32>
    %18 = vector.broadcast %17 : vector<2x1xf32> to vector<2x128xf32>
    %19 = arith.subf %15, %18 : vector<2x128xf32>
    %20 = math.exp %19 : vector<2x128xf32>
    %cst_11 = arith.constant dense<0.000000e+00> : vector<2xf32>
    %21 = vector.multi_reduction <add>, %20, %cst_11 [1] : vector<2x128xf32> to vector<2xf32>
    %22 = vector.shape_cast %21 : vector<2xf32> to vector<2x1xf32>
    %23 = vector.broadcast %22 : vector<2x1xf32> to vector<2x128xf32>
    %24 = arith.divf %20, %23 : vector<2x128xf32>
    %cst_12 = arith.constant 0.000000e+00 : f32
    %25 = vector.broadcast %cst_12 : f32 to vector<2x128xf32>
    %26 = arith.cmpf oeq, %24, %25 : vector<2x128xf32>
    %27 = arith.andi %26, %14 : vector<2x128xi1>
    %cst_13 = arith.constant 1.000000e-07 : f32
    %28 = vector.broadcast %cst_13 : f32 to vector<2x128xf32>
    %29 = arith.select %27, %28, %24 : vector<2x128xi1>, vector<2x128xf32>
    %cst_14 = arith.constant 9.99999982E-15 : f32
    %30 = vector.broadcast %cst_14 : f32 to vector<2x128xf32>
    %31 = arith.addf %29, %30 : vector<2x128xf32>
    %32 = math.log %31 : vector<2x128xf32>
    %cst_15 = arith.constant 0.000000e+00 : f32
    %33 = vector.broadcast %cst_15 : f32 to vector<2x128xf32>
    %34 = arith.subf %33, %32 : vector<2x128xf32>
    %35 = arith.mulf %29, %34 : vector<2x128xf32>
    %cst_16 = arith.constant dense<0.000000e+00> : vector<2xf32>
    %36 = vector.multi_reduction <add>, %35, %cst_16 [1] : vector<2x128xf32> to vector<2xf32>
    %37 = vector.shape_cast %36 : vector<2xf32> to vector<2x1xf32>
    %38 = tpu.reciprocal %37 {approx = true} : vector<2x1xf32> -> vector<2x1xf32>
    %39 = vector.broadcast %38 : vector<2x1xf32> to vector<2x128xf32>
    %40 = arith.mulf %29, %39 : vector<2x128xf32>
    %41 = vector.extract_strided_slice %11 {offsets = [0, 128], sizes = [2, 128], strides = [1, 1]} : vector<2x384xf32> to vector<2x128xf32>
    %cst_17 = arith.constant dense<0xFF800000> : vector<2xf32>
    %42 = vector.multi_reduction <maximumf>, %41, %cst_17 [1] : vector<2x128xf32> to vector<2xf32>
    %43 = vector.shape_cast %42 : vector<2xf32> to vector<2x1xf32>
    %44 = vector.broadcast %43 : vector<2x1xf32> to vector<2x128xf32>
    %45 = arith.subf %41, %44 : vector<2x128xf32>
    %46 = math.exp %45 : vector<2x128xf32>
    %cst_18 = arith.constant dense<0.000000e+00> : vector<2xf32>
    %47 = vector.multi_reduction <add>, %46, %cst_18 [1] : vector<2x128xf32> to vector<2xf32>
    %48 = vector.shape_cast %47 : vector<2xf32> to vector<2x1xf32>
    %49 = vector.broadcast %48 : vector<2x1xf32> to vector<2x128xf32>
    %50 = arith.divf %46, %49 : vector<2x128xf32>
    %cst_19 = arith.constant 0.000000e+00 : f32
    %51 = vector.broadcast %cst_19 : f32 to vector<2x128xf32>
    %52 = arith.cmpf oeq, %50, %51 : vector<2x128xf32>
    %53 = arith.andi %52, %14 : vector<2x128xi1>
    %cst_20 = arith.constant 1.000000e-07 : f32
    %54 = vector.broadcast %cst_20 : f32 to vector<2x128xf32>
    %55 = arith.select %53, %54, %50 : vector<2x128xi1>, vector<2x128xf32>
    %cst_21 = arith.constant 9.99999982E-15 : f32
    %56 = vector.broadcast %cst_21 : f32 to vector<2x128xf32>
    %57 = arith.addf %55, %56 : vector<2x128xf32>
    %58 = math.log %57 : vector<2x128xf32>
    %cst_22 = arith.constant 0.000000e+00 : f32
    %59 = vector.broadcast %cst_22 : f32 to vector<2x128xf32>
    %60 = arith.subf %59, %58 : vector<2x128xf32>
    %61 = arith.mulf %55, %60 : vector<2x128xf32>
    %cst_23 = arith.constant dense<0.000000e+00> : vector<2xf32>
    %62 = vector.multi_reduction <add>, %61, %cst_23 [1] : vector<2x128xf32> to vector<2xf32>
    %63 = vector.shape_cast %62 : vector<2xf32> to vector<2x1xf32>
    %64 = tpu.reciprocal %63 {approx = true} : vector<2x1xf32> -> vector<2x1xf32>
    %65 = vector.broadcast %64 : vector<2x1xf32> to vector<2x128xf32>
    %66 = arith.mulf %55, %65 : vector<2x128xf32>
    %67 = arith.addf %40, %66 : vector<2x128xf32>
    %68 = arith.addf %38, %64 : vector<2x1xf32>
    %69 = vector.extract_strided_slice %11 {offsets = [0, 256], sizes = [2, 128], strides = [1, 1]} : vector<2x384xf32> to vector<2x128xf32>
    %cst_24 = arith.constant dense<0xFF800000> : vector<2xf32>
    %70 = vector.multi_reduction <maximumf>, %69, %cst_24 [1] : vector<2x128xf32> to vector<2xf32>
    %71 = vector.shape_cast %70 : vector<2xf32> to vector<2x1xf32>
    %72 = vector.broadcast %71 : vector<2x1xf32> to vector<2x128xf32>
    %73 = arith.subf %69, %72 : vector<2x128xf32>
    %74 = math.exp %73 : vector<2x128xf32>
    %cst_25 = arith.constant dense<0.000000e+00> : vector<2xf32>
    %75 = vector.multi_reduction <add>, %74, %cst_25 [1] : vector<2x128xf32> to vector<2xf32>
    %76 = vector.shape_cast %75 : vector<2xf32> to vector<2x1xf32>
    %77 = vector.broadcast %76 : vector<2x1xf32> to vector<2x128xf32>
    %78 = arith.divf %74, %77 : vector<2x128xf32>
    %cst_26 = arith.constant 0.000000e+00 : f32
    %79 = vector.broadcast %cst_26 : f32 to vector<2x128xf32>
    %80 = arith.cmpf oeq, %78, %79 : vector<2x128xf32>
    %81 = arith.andi %80, %14 : vector<2x128xi1>
    %cst_27 = arith.constant 1.000000e-07 : f32
    %82 = vector.broadcast %cst_27 : f32 to vector<2x128xf32>
    %83 = arith.select %81, %82, %78 : vector<2x128xi1>, vector<2x128xf32>
    %cst_28 = arith.constant 9.99999982E-15 : f32
    %84 = vector.broadcast %cst_28 : f32 to vector<2x128xf32>
    %85 = arith.addf %83, %84 : vector<2x128xf32>
    %86 = math.log %85 : vector<2x128xf32>
    %cst_29 = arith.constant 0.000000e+00 : f32
    %87 = vector.broadcast %cst_29 : f32 to vector<2x128xf32>
    %88 = arith.subf %87, %86 : vector<2x128xf32>
    %89 = arith.mulf %83, %88 : vector<2x128xf32>
    %cst_30 = arith.constant dense<0.000000e+00> : vector<2xf32>
    %90 = vector.multi_reduction <add>, %89, %cst_30 [1] : vector<2x128xf32> to vector<2xf32>
    %91 = vector.shape_cast %90 : vector<2xf32> to vector<2x1xf32>
    %92 = tpu.reciprocal %91 {approx = true} : vector<2x1xf32> -> vector<2x1xf32>
    %93 = vector.broadcast %92 : vector<2x1xf32> to vector<2x128xf32>
    %94 = arith.mulf %83, %93 : vector<2x128xf32>
    %95 = arith.addf %67, %94 : vector<2x128xf32>
    %96 = arith.addf %68, %92 : vector<2x1xf32>
    %cst_31 = arith.constant 1.000000e+00 : f32
    %97 = vector.broadcast %cst_31 : f32 to vector<2x1xf32>
    %98 = arith.divf %97, %96 : vector<2x1xf32>
    %99 = vector.broadcast %98 : vector<2x1xf32> to vector<2x128xf32>
    %100 = arith.mulf %95, %99 : vector<2x128xf32>
    %c0_32 = arith.constant 0 : index
    %c0_33 = arith.constant 0 : index
    %101 = vector.load %arg6[%c0_32, %c0_33] : memref<2x128xf32, #tpu.memory_space<vmem>>, vector<2x128xf32>
    tpu.vector_store %arg6[%c0_32, %c0_33], %100 {strides = array<i32>} : memref<2x128xf32, #tpu.memory_space<vmem>>, vector<2x128xf32>,
    return
  }
  func.func @transform_0(%arg0: i32) -> (i32, i32) {
    %c0_i32 = arith.constant 0 : i32
    %c0_i32_0 = arith.constant 0 : i32
    return %arg0, %c0_i32 : i32, i32
  }
  func.func @transform_1(%arg0: i32) -> (i32, i32) {
    %c0_i32 = arith.constant 0 : i32
    %c0_i32_0 = arith.constant 0 : i32
    return %arg0, %c0_i32 : i32, i32
  }
  func.func @transform_2(%arg0: i32) -> (i32, i32) {
    %c0_i32 = arith.constant 0 : i32
    %c0_i32_0 = arith.constant 0 : i32
    %c0_i32_1 = arith.constant 0 : i32
    return %c0_i32, %c0_i32_0 : i32, i32
  }
  func.func @transform_3(%arg0: i32) -> (i32, i32) {
    %c0_i32 = arith.constant 0 : i32
    %c0_i32_0 = arith.constant 0 : i32
    %c0_i32_1 = arith.constant 0 : i32
    return %c0_i32, %c0_i32_0 : i32, i32
  }
  func.func @transform_4(%arg0: i32) -> (i32, i32) {
    %c0_i32 = arith.constant 0 : i32
    %c0_i32_0 = arith.constant 0 : i32
    %c0_i32_1 = arith.constant 0 : i32
    return %c0_i32, %c0_i32_0 : i32, i32
  }
  func.func @transform_5(%arg0: i32) -> (i32, i32) {
    %c0_i32 = arith.constant 0 : i32
    %c0_i32_0 = arith.constant 0 : i32
    return %arg0, %c0_i32 : i32, i32
  }
}

</mosaic_0001>

<bundles_post_ra>
// kernel: tpu_custom_call.1
= control target key start
LH: loop header
LB: loop body
LE: loop exit
PB: predicated region body
PF: predicated region fallthrough
CT: control target
= control target key end

     0   :  { %10 = vsyncpa [#allocation3], 0  ;;  %s3208_s0 = inlined_call_operand.hbm [shape: f32[2,1024], index: 0, kind: input, shape index: {}]   ;;  %s3209_s1 = inlined_call_operand.hbm [shape: f32[2,8], index: 1, kind: input, shape index: {}]   ;;  %s3210_s2 = inlined_call_operand.hbm [shape: bf16[1024,384], index: 2, kind: input, shape index: {}]   ;;  %s3211_s3 = inlined_call_operand.hbm [shape: bf16[8,384], index: 3, kind: input, shape index: {}]   ;;  %s3212_s4 = inlined_call_operand.vmem [shape: f32[1,384], index: 4, kind: input, shape index: {}]   ;;  %s3213_s5 = inlined_call_operand.hbm [shape: f32[2,128], index: 5, kind: output, shape index: {}]  }
   0x1   :  { %11 = vsyncpa [#allocation6], 0 }
   0x2   :  { %12 = vsyncpa [#allocation9], 0  ;;  %s30_s20 = sshll.u32 %s3209_s1, 4  ;;  %s31_s20 = int_to_ptr.hbm [resolvable:$true] %s30_s20 }
   0x3   :  { %13 = vsyncpa [#allocation4], 0  ;;  %s3057_s21 = smov [#allocation5]   ;;  %s19_s25 = sshll.u32 %s3208_s0, 4  ;;  %s20_s25 = int_to_ptr.hbm [resolvable:$true] %s19_s25 }
   0x4   :  { %s32_s22 = sshll.u32 %s3057_s21, 4  ;;  %s3058_s26 = smov [#allocation2]   ;;  %s33_s22 = int_to_ptr.vmem [resolvable:$true] %s32_s22 }
   0x5   :  { %35 = dma.hbm_to_vmem [thread:$0]  %s31_s20, 32, %s33_s22, [#allocation6]  }
   0x6   :  { %s21_s27 = sshll.u32 %s3058_s26, 4  ;;  %s40_s30 = sshll.u32 %s3210_s2, 4  ;;  %s22_s27 = int_to_ptr.vmem [resolvable:$true] %s21_s27  ;;  %s41_s30 = int_to_ptr.hbm [resolvable:$true] %s40_s30 }
   0x7   :  { %24 = dma.hbm_to_vmem [thread:$0]  %s20_s25, 256, %s22_s27, [#allocation3]  }
   0x8   :  { %s3059_s1 = smov [#allocation7]   ;;  %s54_s9 = sshll.u32 %s3211_s3, 4  ;;  %s55_s9 = int_to_ptr.hbm [resolvable:$true] %s54_s9 }
   0x9   :  { %s42_s6 = sshll.u32 %s3059_s1, 4  ;;  %s3060_s10 = smov 192   ;;  %s43_s6 = int_to_ptr.vmem [resolvable:$true] %s42_s6 }
   0xa   :  { %s3061_s0 = smov 12   ;;  %s3062_s11 = smov [#allocation8]  }
   0xb   :  { %48 = dma.hbm_to_vmem [thread:$0]  %s41_s30, 24576, %s43_s6, [#allocation6], %s3060_s10, %s3060_s10, %s3061_s0  }
   0xc   :  { %s56_s12 = sshll.u32 %s3062_s11, 4  ;;  %s57_s12 = int_to_ptr.vmem [resolvable:$true] %s56_s12 }
   0xd   :  { %59 = dma.hbm_to_vmem [thread:$0]  %s55_s9, 192, %s57_s12, [#allocation9]  }
   0xe   :  { %3049 = dma.done.wait [#allocation3], 256  }
   0xf   :  { %3050 = vsyncadd [#allocation3], 4294967040 }
  0x10   :  { %3051 = dma.done.wait [#allocation6], 24608  }
  0x11   :  { %3052 = vsyncadd [#allocation6], 4294942688 }
  0x12   :  { %3053 = dma.done.wait [#allocation9], 192  }
  0x13   :  { %3054 = vsyncadd [#allocation9], 4294967104  ;;  %v2022_v0 = vld [vmem:[#allocation7 + $0xa8] sm:$0xf]  ;;  %v2726_v1 = vld [vmem:[#allocation7 + $0xb0] sm:$0xf0] }
  0x14   :  { %v368_v2 = vld [vmem:[#allocation8] sm:$0xff]  ;;  %vm382_vm0 = vcmask 1043456   ;;  %v2023_v3 = vor.u32 %v2726_v1, %v2022_v0  ;;  %v369_v6 = vld [vmem:[#allocation8 + $0x8] sm:$0xf]  ;;  %v2010_v7 = vld [vmem:[#allocation7 + $0x90] sm:$0xf] }
  0x15   :  { %v372_v4 = vunpack.c.l.b16 %v368_v2  ;;  %v373_v5 = vunpack.c.h.b16 %v368_v2  ;;  %v2723_v8 = vld [vmem:[#allocation7 + $0x98] sm:$0xf0]  ;;  %v374_v9 = vunpack.c.l.b16 %v369_v6  ;;  %v2118_v10 = vld [vmem:[#allocation7 + $0x168] sm:$0xf]  ;;  %v2750_v11 = vld [vmem:[#allocation7 + $0x170] sm:$0xf0] }
  0x16   :  { %v2214_v12 = vld [vmem:[#allocation7 + $0x228] sm:$0xf]  ;;  %1455 = vmatpush.bf16.msra.mxu3 %v2023_v3  ;;  %v2011_v15 = vor.u32 %v2723_v8, %v2010_v7  ;;  %v2774_v16 = vld [vmem:[#allocation7 + $0x230] sm:$0xf0]  ;;  %v2119_v20 = vor.u32 %v2750_v11, %v2118_v10  ;;  %v1998_v22 = vld [vmem:[#allocation7 + $0x78] sm:$0xf] }
  0x17   :  { %v375_v13 = vpack.c.b16 %v372_v4, %v372_v4  ;;  %v376_v14 = vpack.c.b16 %v373_v5, %v373_v5  ;;  %v2310_v17 = vld [vmem:[#allocation7 + $0x2e8] sm:$0xf]  ;;  %v2798_v18 = vld [vmem:[#allocation7 + $0x2f0] sm:$0xf0]  ;;  %v377_v19 = vpack.c.b16 %v374_v9, %v374_v9  ;;  %v2215_v21 = vor.u32 %v2774_v16, %v2214_v12  ;;  %v2720_v23 = vld [vmem:[#allocation7 + $0x80] sm:$0xf0] }
  0x18   :  { %v2106_v24 = vld [vmem:[#allocation7 + $0x150] sm:$0xf]  ;;  %v2311_v27 = vor.u32 %v2798_v18, %v2310_v17  ;;  %v2747_v28 = vld [vmem:[#allocation7 + $0x158] sm:$0xf0]  ;;  %v1999_v33 = vor.u32 %v2720_v23, %v1998_v22  ;;  %v1986_v37 = vld [vmem:[#allocation7 + $0x60] sm:$0xf] }
  0x19   :  { %v384_v25 = vsel %vm382_vm0, %v375_v13, 0  ;;  %v387_v26 = vsel %vm382_vm0, %v376_v14, 0  ;;  %v2202_v29 = vld [vmem:[#allocation7 + $0x210] sm:$0xf]  ;;  %v390_v30 = vsel %vm382_vm0, %v377_v19, 0  ;;  %v2107_v35 = vor.u32 %v2747_v28, %v2106_v24  ;;  %s1921_s16 = sshll.u32 %s3213_s5, 4  ;;  %s1922_s16 = int_to_ptr.hbm [resolvable:$true] %s1921_s16 }
  0x1a   :  { %399 = vmatpush.bf16.msra.mxu0 %v384_v25  ;;  %412 = vmatpush.bf16.msra.mxu1 %v387_v26  ;;  %v2771_v31 = vld [vmem:[#allocation7 + $0x218] sm:$0xf0]  ;;  %v2298_v32 = vld [vmem:[#allocation7 + $0x2d0] sm:$0xf]  ;;  %v2717_v38 = vld [vmem:[#allocation7 + $0x68] sm:$0xf0] }
  0x1b   :  { %425 = vmatpush.bf16.msra.mxu2 %v390_v30  ;;  %1456 = vmatpush.bf16.msra.mxu3 %v2011_v15  ;;  %v2795_v34 = vld [vmem:[#allocation7 + $0x2d8] sm:$0xf0]  ;;  %v2203_v36 = vor.u32 %v2771_v31, %v2202_v29  ;;  %v2094_v39 = vld [vmem:[#allocation7 + $0x138] sm:$0xf]  ;;  %v2744_v41 = vld [vmem:[#allocation7 + $0x140] sm:$0xf0]  ;;  %v1987_v46 = vor.u32 %v2717_v38, %v1986_v37 }
  0x1c   :  { %v2299_v40 = vor.u32 %v2795_v34, %v2298_v32  ;;  %v2190_v42 = vld [vmem:[#allocation7 + $0x1f8] sm:$0xf]  ;;  %v2768_v43 = vld [vmem:[#allocation7 + $0x200] sm:$0xf0]  ;;  %v2095_v47 = vor.u32 %v2744_v41, %v2094_v39  ;;  %v1974_v49 = vld [vmem:[#allocation7 + $0x48] sm:$0xf] }
  0x1d   :  { %v2286_v44 = vld [vmem:[#allocation7 + $0x2b8] sm:$0xf]  ;;  %v2792_v45 = vld [vmem:[#allocation7 + $0x2c0] sm:$0xf0]  ;;  %v2191_v48 = vor.u32 %v2768_v43, %v2190_v42  ;;  %v2714_v50 = vld [vmem:[#allocation7 + $0x50] sm:$0xf0] }
  0x1e   :  { %1468 = vmatpush.bf16.msrb.mxu0 %v2119_v20  ;;  %1481 = vmatpush.bf16.msrb.mxu1 %v2215_v21  ;;  %v2082_v51 = vld [vmem:[#allocation7 + $0x120] sm:$0xf]  ;;  %v2287_v52 = vor.u32 %v2792_v45, %v2286_v44  ;;  %v2741_v53 = vld [vmem:[#allocation7 + $0x128] sm:$0xf0]  ;;  %v1975_v58 = vor.u32 %v2714_v50, %v1974_v49  ;;  %v110_v59 = vld [vmem:[#allocation5] sm:$0x3] }
  0x1f   :  { %1494 = vmatpush.bf16.msrb.mxu2 %v2311_v27  ;;  %1457 = vmatpush.bf16.msra.mxu3 %v1999_v33  ;;  %v2178_v54 = vld [vmem:[#allocation7 + $0x1e0] sm:$0xf]  ;;  %v2765_v55 = vld [vmem:[#allocation7 + $0x1e8] sm:$0xf0]  ;;  %vm378_vm1 = vcmask 64512   ;;  %v2083_v60 = vor.u32 %v2741_v53, %v2082_v51  ;;  %v111_v1 = vpack.c.bf16 %v110_v59, %v110_v59  ;;  %vm1781_vm2 = vcmask 1041408  }
  0x20   :  { %v2274_v56 = vld [vmem:[#allocation7 + $0x2a0] sm:$0xf]  ;;  %v2789_v57 = vld [vmem:[#allocation7 + $0x2a8] sm:$0xf0]  ;;  %v2179_v61 = vor.u32 %v2765_v55, %v2178_v54  ;;  %v1962_v62 = vld [vmem:[#allocation7 + $0x30] sm:$0xf] }
  0x21   :  { %v2711_v63 = vld [vmem:[#allocation7 + $0x38] sm:$0xf0]  ;;  %v2070_v0 = vld [vmem:[#allocation7 + $0x108] sm:$0xf]  ;;  %v2275_v2 = vor.u32 %v2789_v57, %v2274_v56  ;;  %v2738_v3 = vld [vmem:[#allocation7 + $0x110] sm:$0xf0]  ;;  %1935 = vmatmul.msk.bf16.vlgmr.msra.gmra.mxu2 %vm378_vm1, %v111_v1  ;;  %1933 = vmatmul.msk.bf16.vlgmr.msra.gmra.mxu0 %vm378_vm1, %v111_v1 }
  0x22   :  { %1469 = vmatpush.bf16.msrb.mxu0 %v2107_v35  ;;  %1482 = vmatpush.bf16.msrb.mxu1 %v2203_v36  ;;  %v2166_v4 = vld [vmem:[#allocation7 + $0x1c8] sm:$0xf]  ;;  %v2762_v5 = vld [vmem:[#allocation7 + $0x1d0] sm:$0xf0]  ;;  %v1963_v9 = vor.u32 %v2711_v63, %v1962_v62  ;;  %v1950_v10 = vld [vmem:[#allocation7 + $0x18] sm:$0xf]  ;;  %v2071_v11 = vor.u32 %v2738_v3, %v2070_v0 }
  0x23   :  { %1495 = vmatpush.bf16.msrb.mxu2 %v2299_v40  ;;  %1458 = vmatpush.bf16.msra.mxu3 %v1987_v46  ;;  %v2262_v6 = vld [vmem:[#allocation7 + $0x288] sm:$0xf]  ;;  %v2786_v7 = vld [vmem:[#allocation7 + $0x290] sm:$0xf0]  ;;  %v2167_v12 = vor.u32 %v2762_v5, %v2166_v4  ;;  %v2708_v13 = vld [vmem:[#allocation7 + $0x20] sm:$0xf0] }
  0x24   :  { %v79_v8 = vld [vmem:[#allocation2] sm:$0xff]  ;;  %1934 = vmatmul.msk.bf16.vlgmr.msra.gmra.mxu1 %vm378_vm1, %v111_v1  ;;  %v2735_v15 = vld [vmem:[#allocation7 + $0xf8] sm:$0xf0]  ;;  %v2263_v16 = vor.u32 %v2786_v7, %v2262_v6  ;;  %v1951_v21 = vor.u32 %v2708_v13, %v1950_v10  ;;  %v1938_v22 = vld [vmem:[#allocation7] sm:$0xf] }
  0x25   :  { %v2058_v14 = vld [vmem:[#allocation7 + $0xf0] sm:$0xf]  ;;  %v2759_v18 = vld [vmem:[#allocation7 + $0x1b8] sm:$0xf0]  ;;  %83 = vst [vmem:[#allocation1] ss:$4 sm:$0xff] %v79_v8 }
  0x26   :  { %1470 = vmatpush.bf16.msrb.mxu0 %v2095_v47  ;;  %1483 = vmatpush.bf16.msrb.mxu1 %v2191_v48  ;;  %v2154_v17 = vld [vmem:[#allocation7 + $0x1b0] sm:$0xf]  ;;  %v2783_v20 = vld [vmem:[#allocation7 + $0x278] sm:$0xf0]  ;;  %v2059_v23 = vor.u32 %v2735_v15, %v2058_v14  ;;  %v2705_v25 = vld [vmem:[#allocation7 + $0x8] sm:$0xf0] }
  0x27   :  { %1496 = vmatpush.bf16.msrb.mxu2 %v2287_v52  ;;  %1459 = vmatpush.bf16.msra.mxu3 %v1975_v58  ;;  %v2250_v19 = vld [vmem:[#allocation7 + $0x270] sm:$0xf]  ;;  %v2155_v24 = vor.u32 %v2759_v18, %v2154_v17  ;;  %v2046_v26 = vld [vmem:[#allocation7 + $0xd8] sm:$0xf]  ;;  %v2732_v27 = vld [vmem:[#allocation7 + $0xe0] sm:$0xf0]  ;;  %v1939_v35 = vor.u32 %v2705_v25, %v1938_v22 }
  0x28   :  { %v2251_v28 = vor.u32 %v2783_v20, %v2250_v19  ;;  %v2142_v29 = vld [vmem:[#allocation7 + $0x198] sm:$0xf]  ;;  %v2756_v30 = vld [vmem:[#allocation7 + $0x1a0] sm:$0xf0]  ;;  %v2406_v33 = vld [vmem:[#allocation7 + $0x3a8] sm:$0xf]  ;;  %v2047_v39 = vor.u32 %v2732_v27, %v2046_v26 }
  0x29   :  { %v2238_v31 = vld [vmem:[#allocation7 + $0x258] sm:$0xf]  ;;  %v2780_v32 = vld [vmem:[#allocation7 + $0x260] sm:$0xf0]  ;;  %v2822_v34 = vld [vmem:[#allocation7 + $0x3b0] sm:$0xf0]  ;;  %v2143_v40 = vor.u32 %v2756_v30, %v2142_v29 }
  0x2a   :  { %1471 = vmatpush.bf16.msrb.mxu0 %v2083_v60  ;;  %1484 = vmatpush.bf16.msrb.mxu1 %v2179_v61  ;;  %v2034_v36 = vld [vmem:[#allocation7 + $0xc0] sm:$0xf]  ;;  %v2729_v37 = vld [vmem:[#allocation7 + $0xc8] sm:$0xf0]  ;;  %v2239_v43 = vor.u32 %v2780_v32, %v2238_v31  ;;  %v2407_v44 = vor.u32 %v2822_v34, %v2406_v33  ;;  %v2394_v47 = vld [vmem:[#allocation7 + $0x390] sm:$0xf] }
  0x2b   :  { %1497 = vmatpush.bf16.msrb.mxu2 %v2275_v2  ;;  %1460 = vmatpush.bf16.msra.mxu3 %v1963_v9  ;;  %v2130_v38 = vld [vmem:[#allocation7 + $0x180] sm:$0xf]  ;;  %v2753_v42 = vld [vmem:[#allocation7 + $0x188] sm:$0xf0]  ;;  %v2819_v49 = vld [vmem:[#allocation7 + $0x398] sm:$0xf0]  ;;  %v2035_v55 = vor.u32 %v2729_v37, %v2034_v36 }
  0x2c   :  { %v86_v41 = vld.sshfl [vmem:[#allocation1] sm:$0xff pattern:$0x73625140]  ;;  %v2226_v45 = vld [vmem:[#allocation7 + $0x240] sm:$0xf]  ;;  %v2131_v56 = vor.u32 %v2753_v42, %v2130_v38  ;;  %v2395_v60 = vor.u32 %v2819_v49, %v2394_v47  ;;  %v80_v26 = vld [vmem:[#allocation2 + $0x8] sm:$0xff] }
  0x2d   :  { %v2777_v46 = vld [vmem:[#allocation7 + $0x248] sm:$0xf0]  ;;  %v3112_v48 = vpack.c.bf16 %v86_v41, %v86_v41  ;;  %v2502_v50 = vld [vmem:[#allocation7 + $0x468] sm:$0xf]  ;;  %v2846_v51 = vld [vmem:[#allocation7 + $0x470] sm:$0xf0] }
  0x2e   :  { %1472 = vmatpush.bf16.msrb.mxu0 %v2071_v11  ;;  %1485 = vmatpush.bf16.msrb.mxu1 %v2167_v12  ;;  %v2598_v52 = vld [vmem:[#allocation7 + $0x528] sm:$0xf]  ;;  %v2870_v53 = vld [vmem:[#allocation7 + $0x530] sm:$0xf0]  ;;  %v2227_v59 = vor.u32 %v2777_v46, %v2226_v45  ;;  %v2503_v63 = vor.u32 %v2846_v51, %v2502_v50  ;;  %v2382_v1 = vld [vmem:[#allocation7 + $0x378] sm:$0xf] }
  0x2f   :  { %1498 = vmatpush.bf16.msrb.mxu2 %v2263_v16  ;;  %1461 = vmatpush.bf16.msra.mxu3 %v1951_v21  ;;  %v2694_v54 = vld [vmem:[#allocation7 + $0x5e8] sm:$0xf]  ;;  %v2894_v57 = vld [vmem:[#allocation7 + $0x5f0] sm:$0xf0]  ;;  %v2599_v0 = vor.u32 %v2870_v53, %v2598_v52  ;;  %v2816_v2 = vld [vmem:[#allocation7 + $0x380] sm:$0xf0] }
  0x30   :  { %v87_v58 = vld.sshfl [vmem:[#allocation1 + $0x8] sm:$0xff pattern:$0x73625140]  ;;  %v89_v61 = vld.sshfl [vmem:[#allocation1 + $0x18] sm:$0xff pattern:$0x73625140]  ;;  %v2695_v4 = vor.u32 %v2894_v57, %v2694_v54  ;;  %v2383_v13 = vor.u32 %v2816_v2, %v2382_v1 }
  0x31   :  { %v88_v62 = vld.sshfl [vmem:[#allocation1 + $0x10] sm:$0xff pattern:$0x73625140]  ;;  %v2490_v3 = vld [vmem:[#allocation7 + $0x450] sm:$0xf]  ;;  %v3115_v8 = vpack.c.bf16 %v87_v58, %v87_v58  ;;  %v3117_v9 = vpack.c.bf16 %v89_v61, %v89_v61 }
  0x32   :  { %1473 = vmatpush.bf16.msrb.mxu0 %v2059_v23  ;;  %1486 = vmatpush.bf16.msrb.mxu1 %v2155_v24  ;;  %v2843_v5 = vld [vmem:[#allocation7 + $0x458] sm:$0xf0]  ;;  %v2586_v6 = vld [vmem:[#allocation7 + $0x510] sm:$0xf]  ;;  %v3119_v12 = vpack.c.bf16 %v88_v62, %v88_v62  ;;  %v2370_v16 = vld [vmem:[#allocation7 + $0x360] sm:$0xf] }
  0x33   :  { %1499 = vmatpush.bf16.msrb.mxu2 %v2251_v28  ;;  %1462 = vmatpush.bf16.msra.mxu3 %v1939_v35  ;;  %v2867_v7 = vld [vmem:[#allocation7 + $0x518] sm:$0xf0]  ;;  %v2682_v10 = vld [vmem:[#allocation7 + $0x5d0] sm:$0xf]  ;;  %v2491_v14 = vor.u32 %v2843_v5, %v2490_v3  ;;  %v2813_v17 = vld [vmem:[#allocation7 + $0x368] sm:$0xf0] }
  0x34   :  { %v2891_v11 = vld [vmem:[#allocation7 + $0x5d8] sm:$0xf0]  ;;  %v2587_v15 = vor.u32 %v2867_v7, %v2586_v6  ;;  %v2478_v18 = vld [vmem:[#allocation7 + $0x438] sm:$0xf]  ;;  %v2840_v20 = vld [vmem:[#allocation7 + $0x440] sm:$0xf0]  ;;  %v2371_v25 = vor.u32 %v2813_v17, %v2370_v16 }
  0x35   :  { %v2683_v19 = vor.u32 %v2891_v11, %v2682_v10  ;;  %v2574_v21 = vld [vmem:[#allocation7 + $0x4f8] sm:$0xf]  ;;  %v2864_v22 = vld [vmem:[#allocation7 + $0x500] sm:$0xf0]  ;;  %v2479_v27 = vor.u32 %v2840_v20, %v2478_v18  ;;  %v2358_v29 = vld [vmem:[#allocation7 + $0x348] sm:$0xf] }
  0x36   :  { %1474 = vmatpush.bf16.msrb.mxu0 %v2047_v39  ;;  %1487 = vmatpush.bf16.msrb.mxu1 %v2143_v40  ;;  %v2670_v23 = vld [vmem:[#allocation7 + $0x5b8] sm:$0xf]  ;;  %v2888_v24 = vld [vmem:[#allocation7 + $0x5c0] sm:$0xf0]  ;;  %v2575_v28 = vor.u32 %v2864_v22, %v2574_v21  ;;  %v2810_v30 = vld [vmem:[#allocation7 + $0x350] sm:$0xf0] }
  0x37   :  { %1500 = vmatpush.bf16.msrb.mxu2 %v2239_v43  ;;  %1507 = vmatpush.bf16.msrb.mxu3 %v2407_v44  ;;  %v2466_v31 = vld [vmem:[#allocation7 + $0x420] sm:$0xf]  ;;  %v2671_v32 = vor.u32 %v2888_v24, %v2670_v23  ;;  %v2837_v33 = vld [vmem:[#allocation7 + $0x428] sm:$0xf0]  ;;  %v2359_v38 = vor.u32 %v2810_v30, %v2358_v29  ;;  %85 = vst [vmem:[#allocation1 + $0x20] ss:$4 sm:$0xff] %v80_v26 }
  0x38   :  { %1463 = vmatmul.bf16.vlgmr.msra.gmra.mxu3 %v3112_v48  ;;  %v2562_v34 = vld [vmem:[#allocation7 + $0x4e0] sm:$0xf]  ;;  %v2861_v35 = vld [vmem:[#allocation7 + $0x4e8] sm:$0xf0]  ;;  %v2467_v39 = vor.u32 %v2837_v33, %v2466_v31  ;;  %v2346_v41 = vld [vmem:[#allocation7 + $0x330] sm:$0xf] }
  0x39   :  { %v2658_v36 = vld [vmem:[#allocation7 + $0x5a0] sm:$0xf]  ;;  %v2885_v37 = vld [vmem:[#allocation7 + $0x5a8] sm:$0xf0]  ;;  %v2563_v40 = vor.u32 %v2861_v35, %v2562_v34  ;;  %v2807_v42 = vld [vmem:[#allocation7 + $0x338] sm:$0xf0] }
  0x3a   :  { %1475 = vmatpush.bf16.msrb.mxu0 %v2035_v55  ;;  %1488 = vmatpush.bf16.msrb.mxu1 %v2131_v56  ;;  %v2454_v43 = vld [vmem:[#allocation7 + $0x408] sm:$0xf]  ;;  %v2659_v44 = vor.u32 %v2885_v37, %v2658_v36  ;;  %v2834_v45 = vld [vmem:[#allocation7 + $0x410] sm:$0xf0]  ;;  %v2347_v51 = vor.u32 %v2807_v42, %v2346_v41  ;;  %v2334_v54 = vld [vmem:[#allocation7 + $0x318] sm:$0xf] }
  0x3b   :  { %1501 = vmatpush.bf16.msrb.mxu2 %v2227_v59  ;;  %1508 = vmatpush.bf16.msrb.mxu3 %v2395_v60  ;;  %v2550_v46 = vld [vmem:[#allocation7 + $0x4c8] sm:$0xf]  ;;  %v2858_v47 = vld [vmem:[#allocation7 + $0x4d0] sm:$0xf0]  ;;  %v2455_v52 = vor.u32 %v2834_v45, %v2454_v43  ;;  %v2804_v55 = vld [vmem:[#allocation7 + $0x320] sm:$0xf0] }
  0x3c   :  { %v2646_v49 = vld [vmem:[#allocation7 + $0x588] sm:$0xf]  ;;  %v2882_v50 = vld [vmem:[#allocation7 + $0x590] sm:$0xf0]  ;;  %v2551_v53 = vor.u32 %v2858_v47, %v2550_v46  ;;  %v2442_v56 = vld [vmem:[#allocation7 + $0x3f0] sm:$0xf] }
  0x3d   :  { %1476 = vmatmul.bf16.vlgmr.msrb.gmra.mxu0 %v3115_v8  ;;  %1489 = vmatmul.bf16.vlgmr.msrb.gmra.mxu1 %v3119_v12  ;;  %v2647_v57 = vor.u32 %v2882_v50, %v2646_v49  ;;  %v2831_v58 = vld [vmem:[#allocation7 + $0x3f8] sm:$0xf0]  ;;  %v2538_v59 = vld [vmem:[#allocation7 + $0x4b0] sm:$0xf]  ;;  %v2801_v3 = vld [vmem:[#allocation7 + $0x308] sm:$0xf0] }
  0x3e   :  { %1520 = vmatpush.bf16.msra.mxu0 %v2503_v63  ;;  %1533 = vmatpush.bf16.msra.mxu1 %v2599_v0  ;;  %v2855_v60 = vld [vmem:[#allocation7 + $0x4b8] sm:$0xf0]  ;;  %v2634_v61 = vld [vmem:[#allocation7 + $0x570] sm:$0xf]  ;;  %v2335_v63 = vor.u32 %v2804_v55, %v2334_v54  ;;  %v2322_v0 = vld [vmem:[#allocation7 + $0x300] sm:$0xf]  ;;  %v2443_v1 = vor.u32 %v2831_v58, %v2442_v56 }
  0x3f   :  { %1546 = vmatpush.bf16.msra.mxu2 %v2695_v4  ;;  %1509 = vmatpush.bf16.msrb.mxu3 %v2383_v13  ;;  %v2879_v62 = vld [vmem:[#allocation7 + $0x578] sm:$0xf0]  ;;  %v2539_v2 = vor.u32 %v2855_v60, %v2538_v59  ;;  %v2430_v4 = vld [vmem:[#allocation7 + $0x3d8] sm:$0xf]  ;;  %v2828_v5 = vld [vmem:[#allocation7 + $0x3e0] sm:$0xf0]  ;;  %v2323_v16 = vor.u32 %v2801_v3, %v2322_v0 }
  0x40   :  { %1502 = vmatmul.bf16.vlgmr.msrb.gmra.mxu2 %v3117_v9  ;;  %v2635_v6 = vor.u32 %v2879_v62, %v2634_v61  ;;  %v2526_v7 = vld [vmem:[#allocation7 + $0x498] sm:$0xf]  ;;  %v2852_v10 = vld [vmem:[#allocation7 + $0x4a0] sm:$0xf0]  ;;  %v2418_v18 = vld [vmem:[#allocation7 + $0x3c0] sm:$0xf] }
  0x41   :  { %v2622_v11 = vld [vmem:[#allocation7 + $0x558] sm:$0xf]  ;;  %v2876_v13 = vld [vmem:[#allocation7 + $0x560] sm:$0xf0]  ;;  %v2527_v20 = vor.u32 %v2852_v10, %v2526_v7  ;;  %v2825_v21 = vld [vmem:[#allocation7 + $0x3c8] sm:$0xf0] }
  0x42   :  { %1521 = vmatpush.bf16.msra.mxu0 %v2491_v14  ;;  %1534 = vmatpush.bf16.msra.mxu1 %v2587_v15  ;;  %v2725_v14 = vld [vmem:[#allocation7 + $0xac] sm:$0xf]  ;;  %v2024_v15 = vld [vmem:[#allocation7 + $0xb4] sm:$0xf0]  ;;  %v2514_v22 = vld [vmem:[#allocation7 + $0x480] sm:$0xf]  ;;  %v2623_v24 = vor.u32 %v2876_v13, %v2622_v11  ;;  %v2419_v36 = vor.u32 %v2825_v21, %v2418_v18 }
  0x43   :  { %1547 = vmatpush.bf16.msra.mxu2 %v2683_v19  ;;  %1510 = vmatpush.bf16.msrb.mxu3 %v2371_v25  ;;  %v90_v17 = vld.sshfl [vmem:[#allocation1 + $0x20] sm:$0xff pattern:$0x73625140]  ;;  %v2431_v19 = vor.u32 %v2828_v5, %v2430_v4  ;;  %v2027_v25 = vor.u32 %v2725_v14, %v2024_v15  ;;  %v2610_v26 = vld [vmem:[#allocation7 + $0x540] sm:$0xf] }
  0x44   :  { %v2849_v23 = vld [vmem:[#allocation7 + $0x488] sm:$0xf0]  ;;  %v3124_v29 = vpack.c.bf16 %v90_v17, %v90_v17  ;;  %v2012_v30 = vld [vmem:[#allocation7 + $0x9c] sm:$0xf0]  ;;  %v2216_v34 = vld [vmem:[#allocation7 + $0x234] sm:$0xf0] }
  0x45   :  { %v2749_v31 = vld [vmem:[#allocation7 + $0x16c] sm:$0xf]  ;;  %v2515_v37 = vor.u32 %v2849_v23, %v2514_v22  ;;  %v93_v42 = vld.sshfl [vmem:[#allocation1 + $0x38] sm:$0xff pattern:$0x73625140] }
  0x46   :  { %1522 = vmatpush.bf16.msra.mxu0 %v2479_v27  ;;  %1535 = vmatpush.bf16.msra.mxu1 %v2575_v28  ;;  %v2873_v27 = vld [vmem:[#allocation7 + $0x548] sm:$0xf0]  ;;  %v2722_v28 = vld [vmem:[#allocation7 + $0x94] sm:$0xf]  ;;  %v2719_v46 = vld [vmem:[#allocation7 + $0x7c] sm:$0xf]  ;;  %v3129_v55 = vpack.c.bf16 %v93_v42, %v93_v42 }
  0x47   :  { %1548 = vmatpush.bf16.msra.mxu2 %v2671_v32  ;;  %1511 = vmatpush.bf16.msrb.mxu3 %v2359_v38  ;;  %v2120_v32 = vld [vmem:[#allocation7 + $0x174] sm:$0xf0]  ;;  %v2773_v33 = vld [vmem:[#allocation7 + $0x22c] sm:$0xf]  ;;  %v2015_v41 = vor.u32 %v2722_v28, %v2012_v30  ;;  %v2000_v47 = vld [vmem:[#allocation7 + $0x84] sm:$0xf0] }
  0x48   :  { %v2797_v35 = vld [vmem:[#allocation7 + $0x2ec] sm:$0xf]  ;;  %v2312_v38 = vld [vmem:[#allocation7 + $0x2f4] sm:$0xf0]  ;;  %v2219_v45 = vor.u32 %v2773_v33, %v2216_v34  ;;  %v2746_v49 = vld [vmem:[#allocation7 + $0x154] sm:$0xf]  ;;  %v2003_v59 = vor.u32 %v2719_v46, %v2000_v47 }
  0x49   :  { %v92_v43 = vld.sshfl [vmem:[#allocation1 + $0x30] sm:$0xff pattern:$0x73625140]  ;;  %v2315_v50 = vor.u32 %v2797_v35, %v2312_v38  ;;  %v2716_v62 = vld [vmem:[#allocation7 + $0x64] sm:$0xf] }
  0x4a   :  { %1523 = vmatpush.bf16.msra.mxu0 %v2467_v39  ;;  %1536 = vmatpush.bf16.msra.mxu1 %v2563_v40  ;;  %v91_v39 = vld.sshfl [vmem:[#allocation1 + $0x28] sm:$0xff pattern:$0x73625140]  ;;  %v2611_v40 = vor.u32 %v2873_v27, %v2610_v26  ;;  %v3131_v58 = vpack.c.bf16 %v92_v43, %v92_v43  ;;  %v2743_v0 = vld [vmem:[#allocation7 + $0x13c] sm:$0xf] }
  0x4b   :  { %1549 = vmatpush.bf16.msra.mxu2 %v2659_v44  ;;  %1512 = vmatpush.bf16.msrb.mxu3 %v2347_v51  ;;  %v2123_v44 = vor.u32 %v2749_v31, %v2120_v32  ;;  %v2108_v51 = vld [vmem:[#allocation7 + $0x15c] sm:$0xf0]  ;;  %v3127_v54 = vpack.c.bf16 %v91_v39, %v91_v39  ;;  %v2794_v56 = vld [vmem:[#allocation7 + $0x2d4] sm:$0xf]  ;;  %v2767_v3 = vld [vmem:[#allocation7 + $0x1fc] sm:$0xf] }
  0x4c   :  { %v2111_v60 = vor.u32 %v2746_v49, %v2108_v51  ;;  %v2192_v4 = vld [vmem:[#allocation7 + $0x204] sm:$0xf0]  ;;  %v2791_v5 = vld [vmem:[#allocation7 + $0x2bc] sm:$0xf]  ;;  %v2713_v13 = vld [vmem:[#allocation7 + $0x4c] sm:$0xf] }
  0x4d   :  { %v2195_v11 = vor.u32 %v2767_v3, %v2192_v4  ;;  %v1976_v14 = vld [vmem:[#allocation7 + $0x54] sm:$0xf0]  ;;  %v2740_v15 = vld [vmem:[#allocation7 + $0x124] sm:$0xf]  ;;  %v2084_v17 = vld [vmem:[#allocation7 + $0x12c] sm:$0xf0] }
  0x4e   :  { %1524 = vmatpush.bf16.msra.mxu0 %v2455_v52  ;;  %1537 = vmatpush.bf16.msra.mxu1 %v2551_v53  ;;  %v2770_v52 = vld [vmem:[#allocation7 + $0x214] sm:$0xf]  ;;  %v2204_v53 = vld [vmem:[#allocation7 + $0x21c] sm:$0xf0]  ;;  %v2764_v18 = vld [vmem:[#allocation7 + $0x1e4] sm:$0xf]  ;;  %v1979_v22 = vor.u32 %v2713_v13, %v1976_v14  ;;  %v2087_v23 = vor.u32 %v2740_v15, %v2084_v17 }
  0x4f   :  { %1550 = vmatpush.bf16.msra.mxu2 %v2647_v57  ;;  %1513 = vmatpush.bf16.msrb.mxu3 %v2335_v63  ;;  %v2300_v57 = vld [vmem:[#allocation7 + $0x2dc] sm:$0xf0]  ;;  %v2207_v61 = vor.u32 %v2770_v52, %v2204_v53  ;;  %v1988_v63 = vld [vmem:[#allocation7 + $0x6c] sm:$0xf0]  ;;  %v2737_v27 = vld [vmem:[#allocation7 + $0x10c] sm:$0xf] }
  0x50   :  { %v1991_v7 = vor.u32 %v2716_v62, %v1988_v63  ;;  %v2276_v21 = vld [vmem:[#allocation7 + $0x2ac] sm:$0xf0]  ;;  %v1964_v26 = vld [vmem:[#allocation7 + $0x3c] sm:$0xf0]  ;;  %v2072_v30 = vld [vmem:[#allocation7 + $0x114] sm:$0xf0] }
  0x51   :  { %v2761_v31 = vld [vmem:[#allocation7 + $0x1cc] sm:$0xf]  ;;  %v2168_v32 = vld [vmem:[#allocation7 + $0x1d4] sm:$0xf0]  ;;  %v2707_v38 = vld [vmem:[#allocation7 + $0x1c] sm:$0xf] }
  0x52   :  { %1525 = vmatpush.bf16.msra.mxu0 %v2443_v1  ;;  %1538 = vmatpush.bf16.msra.mxu1 %v2539_v2  ;;  %v2303_v1 = vor.u32 %v2794_v56, %v2300_v57  ;;  %v2096_v2 = vld [vmem:[#allocation7 + $0x144] sm:$0xf0]  ;;  %v2785_v33 = vld [vmem:[#allocation7 + $0x28c] sm:$0xf]  ;;  %v2264_v34 = vld [vmem:[#allocation7 + $0x294] sm:$0xf0] }
  0x53   :  { %1551 = vmatpush.bf16.msra.mxu2 %v2635_v6  ;;  %1514 = vmatpush.bf16.msrb.mxu3 %v2323_v16  ;;  %v2288_v6 = vld [vmem:[#allocation7 + $0x2c4] sm:$0xf0]  ;;  %v2099_v10 = vor.u32 %v2743_v0, %v2096_v2  ;;  %v2060_v42 = vld [vmem:[#allocation7 + $0xfc] sm:$0xf0]  ;;  %v2758_v43 = vld [vmem:[#allocation7 + $0x1b4] sm:$0xf] }
  0x54   :  { %v2291_v16 = vor.u32 %v2791_v5, %v2288_v6  ;;  %v1952_v39 = vld [vmem:[#allocation7 + $0x24] sm:$0xf0]  ;;  %v2252_v46 = vld [vmem:[#allocation7 + $0x27c] sm:$0xf0]  ;;  %v2704_v49 = vld [vmem:[#allocation7 + $0x4] sm:$0xf] }
  0x55   :  { %v1955_v47 = vor.u32 %v2707_v38, %v1952_v39  ;;  %v1940_v52 = vld [vmem:[#allocation7 + $0xc] sm:$0xf0]  ;;  %v2731_v53 = vld [vmem:[#allocation7 + $0xdc] sm:$0xf]  ;;  %v2048_v56 = vld [vmem:[#allocation7 + $0xe4] sm:$0xf0] }
  0x56   :  { %1526 = vmatpush.bf16.msra.mxu0 %v2431_v19  ;;  %1539 = vmatpush.bf16.msra.mxu1 %v2527_v20  ;;  %v2180_v19 = vld [vmem:[#allocation7 + $0x1ec] sm:$0xf0]  ;;  %v2788_v20 = vld [vmem:[#allocation7 + $0x2a4] sm:$0xf]  ;;  %v2240_v62 = vld [vmem:[#allocation7 + $0x264] sm:$0xf0]  ;;  %v2051_v2 = vor.u32 %v2731_v53, %v2048_v56 }
  0x57   :  { %1552 = vmatpush.bf16.msra.mxu2 %v2623_v24  ;;  %1559 = vmatpush.bf16.msra.mxu3 %v2027_v25  ;;  %v2183_v24 = vor.u32 %v2764_v18, %v2180_v19  ;;  %v2710_v25 = vld [vmem:[#allocation7 + $0x34] sm:$0xf]  ;;  %v2279_v28 = vor.u32 %v2788_v20, %v2276_v21  ;;  %v2821_v63 = vld [vmem:[#allocation7 + $0x3ac] sm:$0xf]  ;;  %v2408_v0 = vld [vmem:[#allocation7 + $0x3b4] sm:$0xf0] }
  0x58   :  { %1515 = vmatmul.bf16.vlgmr.msrb.gmra.mxu3 %v3124_v29  ;;  %v1967_v35 = vor.u32 %v2710_v25, %v1964_v26  ;;  %v2728_v4 = vld [vmem:[#allocation7 + $0xc4] sm:$0xf]  ;;  %v2036_v5 = vld [vmem:[#allocation7 + $0xcc] sm:$0xf0]  ;;  %v2818_v15 = vld [vmem:[#allocation7 + $0x394] sm:$0xf] }
  0x59   :  { %v2752_v6 = vld [vmem:[#allocation7 + $0x184] sm:$0xf]  ;;  %v2228_v14 = vld [vmem:[#allocation7 + $0x24c] sm:$0xf0]  ;;  %v2845_v17 = vld [vmem:[#allocation7 + $0x46c] sm:$0xf]  ;;  %v2039_v21 = vor.u32 %v2728_v4, %v2036_v5 }
  0x5a   :  { %1527 = vmatpush.bf16.msra.mxu0 %v2419_v36  ;;  %1540 = vmatpush.bf16.msra.mxu1 %v2515_v37  ;;  %v2075_v36 = vor.u32 %v2737_v27, %v2072_v30  ;;  %v2171_v37 = vor.u32 %v2761_v31, %v2168_v32  ;;  %v2776_v13 = vld [vmem:[#allocation7 + $0x244] sm:$0xf]  ;;  %v2504_v18 = vld [vmem:[#allocation7 + $0x474] sm:$0xf0]  ;;  %v2869_v19 = vld [vmem:[#allocation7 + $0x52c] sm:$0xf] }
  0x5b   :  { %1553 = vmatpush.bf16.msra.mxu2 %v2611_v40  ;;  %1560 = vmatpush.bf16.msra.mxu3 %v2015_v41  ;;  %v2734_v40 = vld [vmem:[#allocation7 + $0xf4] sm:$0xf]  ;;  %v2267_v41 = vor.u32 %v2785_v33, %v2264_v34  ;;  %v2600_v20 = vld [vmem:[#allocation7 + $0x534] sm:$0xf0]  ;;  %v2231_v25 = vor.u32 %v2776_v13, %v2228_v14  ;;  %v2507_v27 = vor.u32 %v2845_v17, %v2504_v18  ;;  %v2815_v30 = vld [vmem:[#allocation7 + $0x37c] sm:$0xf] }
  0x5c   :  { %v2384_v31 = vld [vmem:[#allocation7 + $0x384] sm:$0xf0]  ;;  %v2842_v32 = vld [vmem:[#allocation7 + $0x454] sm:$0xf]  ;;  %v2492_v34 = vld [vmem:[#allocation7 + $0x45c] sm:$0xf0] }
  0x5d   :  { %1528 = vmatmul.bf16.vlgmr.msra.gmra.mxu0 %v3127_v54  ;;  %1541 = vmatmul.bf16.vlgmr.msra.gmra.mxu1 %v3131_v58  ;;  %v2684_v38 = vld [vmem:[#allocation7 + $0x5dc] sm:$0xf0]  ;;  %v2387_v39 = vor.u32 %v2815_v30, %v2384_v31  ;;  %v2456_v13 = vld [vmem:[#allocation7 + $0x414] sm:$0xf0]  ;;  %v2857_v14 = vld [vmem:[#allocation7 + $0x4cc] sm:$0xf] }
  0x5e   :  { %1572 = vmatpush.bf16.msrb.mxu0 %v2123_v44  ;;  %1585 = vmatpush.bf16.msrb.mxu1 %v2219_v45  ;;  %v2156_v44 = vld [vmem:[#allocation7 + $0x1bc] sm:$0xf0]  ;;  %v2782_v45 = vld [vmem:[#allocation7 + $0x274] sm:$0xf]  ;;  %v2648_v17 = vld [vmem:[#allocation7 + $0x594] sm:$0xf0] }
  0x5f   :  { %1598 = vmatpush.bf16.msrb.mxu2 %v2315_v50  ;;  %1561 = vmatpush.bf16.msra.mxu3 %v2003_v59  ;;  %v2063_v50 = vor.u32 %v2734_v40, %v2060_v42  ;;  %v2159_v51 = vor.u32 %v2758_v43, %v2156_v44  ;;  %v2255_v57 = vor.u32 %v2782_v45, %v2252_v46  ;;  %v2755_v59 = vld [vmem:[#allocation7 + $0x19c] sm:$0xf]  ;;  %v2812_v42 = vld [vmem:[#allocation7 + $0x364] sm:$0xf]  ;;  %v2372_v43 = vld [vmem:[#allocation7 + $0x36c] sm:$0xf0] }
  0x60   :  { %1554 = vmatmul.bf16.vlgmr.msra.gmra.mxu2 %v3129_v55  ;;  %v2495_v40 = vor.u32 %v2842_v32, %v2492_v34  ;;  %v2839_v44 = vld [vmem:[#allocation7 + $0x43c] sm:$0xf]  ;;  %v2480_v46 = vld [vmem:[#allocation7 + $0x444] sm:$0xf0]  ;;  %v2636_v30 = vld [vmem:[#allocation7 + $0x57c] sm:$0xf0] }
  0x61   :  { %v2483_v53 = vor.u32 %v2839_v44, %v2480_v46  ;;  %v2800_v32 = vld [vmem:[#allocation7 + $0x304] sm:$0xf]  ;;  %v2727_v44 = vld [vmem:[#allocation7 + $0xb8] sm:$0xf0] }
  0x62   :  { %1573 = vmatpush.bf16.msrb.mxu0 %v2111_v60  ;;  %1586 = vmatpush.bf16.msrb.mxu1 %v2207_v61  ;;  %v2144_v60 = vld [vmem:[#allocation7 + $0x1a4] sm:$0xf0]  ;;  %v2779_v61 = vld [vmem:[#allocation7 + $0x25c] sm:$0xf] }
  0x63   :  { %1599 = vmatpush.bf16.msrb.mxu2 %v2303_v1  ;;  %1562 = vmatpush.bf16.msra.mxu3 %v1991_v7  ;;  %v1943_v1 = vor.u32 %v2704_v49, %v1940_v52  ;;  %v2147_v3 = vor.u32 %v2755_v59, %v2144_v60  ;;  %v2243_v7 = vor.u32 %v2779_v61, %v2240_v62  ;;  %v2576_v49 = vld [vmem:[#allocation7 + $0x504] sm:$0xf0]  ;;  %v2360_v59 = vld [vmem:[#allocation7 + $0x354] sm:$0xf0]  ;;  %v2836_v60 = vld [vmem:[#allocation7 + $0x424] sm:$0xf] }
  0x64   :  { %v2375_v52 = vor.u32 %v2812_v42, %v2372_v43  ;;  %v2468_v62 = vld [vmem:[#allocation7 + $0x42c] sm:$0xf0]  ;;  %v2624_v42 = vld [vmem:[#allocation7 + $0x564] sm:$0xf0] }
  0x65   :  { %v2471_v4 = vor.u32 %v2836_v60, %v2468_v62  ;;  %v2030_v43 = vld [vmem:[#allocation7 + $0xb0] sm:$0xf]  ;;  %v2018_v60 = vld [vmem:[#allocation7 + $0x98] sm:$0xf] }
  0x66   :  { %1574 = vmatpush.bf16.msrb.mxu0 %v2099_v10  ;;  %1587 = vmatpush.bf16.msrb.mxu1 %v2195_v11  ;;  %v2411_v10 = vor.u32 %v2821_v63, %v2408_v0  ;;  %v2132_v11 = vld [vmem:[#allocation7 + $0x18c] sm:$0xf0]  ;;  %v2860_v63 = vld [vmem:[#allocation7 + $0x4e4] sm:$0xf] }
  0x67   :  { %1600 = vmatpush.bf16.msrb.mxu2 %v2291_v16  ;;  %1563 = vmatpush.bf16.msra.mxu3 %v1979_v22  ;;  %v2396_v16 = vld [vmem:[#allocation7 + $0x39c] sm:$0xf0]  ;;  %v2135_v22 = vor.u32 %v2752_v6, %v2132_v11  ;;  %v2564_v0 = vld [vmem:[#allocation7 + $0x4ec] sm:$0xf0]  ;;  %v2806_v6 = vld [vmem:[#allocation7 + $0x334] sm:$0xf] }
  0x68   :  { %v2399_v26 = vor.u32 %v2818_v15, %v2396_v16  ;;  %v2567_v5 = vor.u32 %v2860_v63, %v2564_v0  ;;  %v2552_v15 = vld [vmem:[#allocation7 + $0x4d4] sm:$0xf0]  ;;  %v2881_v16 = vld [vmem:[#allocation7 + $0x58c] sm:$0xf]  ;;  %v2126_v62 = vld [vmem:[#allocation7 + $0x170] sm:$0xf] }
  0x69   :  { %v2751_v63 = vld [vmem:[#allocation7 + $0x178] sm:$0xf0]  ;;  %v2222_v0 = vld [vmem:[#allocation7 + $0x230] sm:$0xf] }
  0x6a   :  { %1575 = vmatpush.bf16.msrb.mxu0 %v2087_v23  ;;  %1588 = vmatpush.bf16.msrb.mxu1 %v2183_v24  ;;  %v2893_v23 = vld [vmem:[#allocation7 + $0x5ec] sm:$0xf]  ;;  %v2696_v24 = vld [vmem:[#allocation7 + $0x5f4] sm:$0xf0] }
  0x6b   :  { %1601 = vmatpush.bf16.msrb.mxu2 %v2279_v28  ;;  %1564 = vmatpush.bf16.msra.mxu3 %v1967_v35  ;;  %v2603_v28 = vor.u32 %v2869_v19, %v2600_v20  ;;  %v2699_v33 = vor.u32 %v2893_v23, %v2696_v24  ;;  %v2866_v35 = vld [vmem:[#allocation7 + $0x514] sm:$0xf]  ;;  %v2555_v20 = vor.u32 %v2857_v14, %v2552_v15  ;;  %v2721_v14 = vld [vmem:[#allocation7 + $0x88] sm:$0xf0]  ;;  %v2114_v15 = vld [vmem:[#allocation7 + $0x158] sm:$0xf] }
  0x6c   :  { %v2830_v23 = vld [vmem:[#allocation7 + $0x3f4] sm:$0xf]  ;;  %v2651_v24 = vor.u32 %v2881_v16, %v2648_v17  ;;  %v2748_v17 = vld [vmem:[#allocation7 + $0x160] sm:$0xf0] }
  0x6e   :  { %1576 = vmatpush.bf16.msrb.mxu0 %v2075_v36  ;;  %1589 = vmatpush.bf16.msrb.mxu1 %v2171_v37  ;;  %v2588_v36 = vld [vmem:[#allocation7 + $0x51c] sm:$0xf0]  ;;  %v2890_v37 = vld [vmem:[#allocation7 + $0x5d4] sm:$0xf] }
  0x6f   :  { %1602 = vmatpush.bf16.msrb.mxu2 %v2267_v41  ;;  %1565 = vmatpush.bf16.msra.mxu3 %v1955_v47  ;;  %v2591_v41 = vor.u32 %v2866_v35, %v2588_v36  ;;  %v2687_v45 = vor.u32 %v2890_v37, %v2684_v38  ;;  %v2863_v47 = vld [vmem:[#allocation7 + $0x4fc] sm:$0xf]  ;;  %v2324_v35 = vld [vmem:[#allocation7 + $0x30c] sm:$0xf0]  ;;  %v2432_v37 = vld [vmem:[#allocation7 + $0x3e4] sm:$0xf0] }
  0x70   :  { %v2579_v56 = vor.u32 %v2863_v47, %v2576_v49  ;;  %v2827_v36 = vld [vmem:[#allocation7 + $0x3dc] sm:$0xf]  ;;  %v2824_v49 = vld [vmem:[#allocation7 + $0x3c4] sm:$0xf] }
  0x71   :  { %v2435_v46 = vor.u32 %v2827_v36, %v2432_v37 }
  0x72   :  { %1577 = vmatpush.bf16.msrb.mxu0 %v2063_v50  ;;  %1590 = vmatpush.bf16.msrb.mxu1 %v2159_v51  ;;  %v2887_v50 = vld [vmem:[#allocation7 + $0x5bc] sm:$0xf]  ;;  %v2672_v51 = vld [vmem:[#allocation7 + $0x5c4] sm:$0xf0] }
  0x73   :  { %1603 = vmatpush.bf16.msrb.mxu2 %v2255_v57  ;;  %1566 = vmatpush.bf16.msra.mxu3 %v1943_v1  ;;  %v2809_v57 = vld [vmem:[#allocation7 + $0x34c] sm:$0xf]  ;;  %v2675_v61 = vor.u32 %v2887_v50, %v2672_v51  ;;  %v2884_v1 = vld [vmem:[#allocation7 + $0x5a4] sm:$0xf]  ;;  %v2420_v50 = vld [vmem:[#allocation7 + $0x3cc] sm:$0xf0] }
  0x74   :  { %v2848_v51 = vld [vmem:[#allocation7 + $0x484] sm:$0xf] }
  0x76   :  { %1578 = vmatpush.bf16.msrb.mxu0 %v2051_v2  ;;  %1591 = vmatpush.bf16.msrb.mxu1 %v2147_v3  ;;  %v2660_v2 = vld [vmem:[#allocation7 + $0x5ac] sm:$0xf0]  ;;  %v2363_v3 = vor.u32 %v2809_v57, %v2360_v59  ;;  %v2872_v57 = vld [vmem:[#allocation7 + $0x544] sm:$0xf] }
  0x77   :  { %1604 = vmatpush.bf16.msrb.mxu2 %v2243_v7  ;;  %1611 = vmatpush.bf16.msrb.mxu3 %v2411_v10  ;;  %v2348_v7 = vld [vmem:[#allocation7 + $0x33c] sm:$0xf0]  ;;  %v2833_v10 = vld [vmem:[#allocation7 + $0x40c] sm:$0xf]  ;;  %v2663_v11 = vor.u32 %v2884_v1, %v2660_v2  ;;  %v2612_v59 = vld [vmem:[#allocation7 + $0x54c] sm:$0xf0]  ;;  %v2423_v2 = vor.u32 %v2824_v49, %v2420_v50 }
  0x78   :  { %1567 = vmatmul.bf16.vlgmr.msra.gmra.mxu3 %v3112_v48  ;;  %v2351_v18 = vor.u32 %v2806_v6, %v2348_v7  ;;  %v2459_v19 = vor.u32 %v2833_v10, %v2456_v13  ;;  %v2775_v1 = vld [vmem:[#allocation7 + $0x238] sm:$0xf0]  ;;  %v2615_v6 = vor.u32 %v2872_v57, %v2612_v59  ;;  %v2127_v10 = vor.u32 %v2751_v63, %v2126_v62  ;;  %v2006_v13 = vld [vmem:[#allocation7 + $0x80] sm:$0xf]  ;;  %v2174_v59 = vld [vmem:[#allocation7 + $0x1d0] sm:$0xf] }
  0x79   :  { %v2739_v57 = vld [vmem:[#allocation7 + $0x118] sm:$0xf0] }
  0x7a   :  { %1579 = vmatpush.bf16.msrb.mxu0 %v2039_v21  ;;  %1592 = vmatpush.bf16.msrb.mxu1 %v2135_v22  ;;  %v2803_v21 = vld [vmem:[#allocation7 + $0x31c] sm:$0xf]  ;;  %v2336_v22 = vld [vmem:[#allocation7 + $0x324] sm:$0xf0] }
  0x7b   :  { %1605 = vmatpush.bf16.msrb.mxu2 %v2231_v25  ;;  %1612 = vmatpush.bf16.msrb.mxu3 %v2399_v26  ;;  %v2444_v25 = vld [vmem:[#allocation7 + $0x3fc] sm:$0xf0]  ;;  %v2854_v26 = vld [vmem:[#allocation7 + $0x4b4] sm:$0xf]  ;;  %v2339_v31 = vor.u32 %v2803_v21, %v2336_v22  ;;  %v2796_v21 = vld [vmem:[#allocation7 + $0x2e0] sm:$0xf0]  ;;  %v2007_v22 = vor.u32 %v2721_v14, %v2006_v13 }
  0x7c   :  { %v2787_v62 = vld [vmem:[#allocation7 + $0x298] sm:$0xf0]  ;;  %v2784_v13 = vld [vmem:[#allocation7 + $0x280] sm:$0xf0] }
  0x7d   :  { %1580 = vmatmul.bf16.vlgmr.msrb.gmra.mxu0 %v3115_v8  ;;  %1593 = vmatmul.bf16.vlgmr.msrb.gmra.mxu1 %v3119_v12 }
  0x7e   :  { %1624 = vmatpush.bf16.msra.mxu0 %v2507_v27  ;;  %1637 = vmatpush.bf16.msra.mxu1 %v2603_v28  ;;  %v2540_v27 = vld [vmem:[#allocation7 + $0x4bc] sm:$0xf0]  ;;  %v2878_v28 = vld [vmem:[#allocation7 + $0x574] sm:$0xf] }
  0x7f   :  { %1650 = vmatpush.bf16.msra.mxu2 %v2699_v33  ;;  %1613 = vmatpush.bf16.msrb.mxu3 %v2387_v39  ;;  %v2447_v33 = vor.u32 %v2830_v23, %v2444_v25  ;;  %v2543_v34 = vor.u32 %v2854_v26, %v2540_v27  ;;  %v2639_v38 = vor.u32 %v2878_v28, %v2636_v30  ;;  %v2851_v39 = vld [vmem:[#allocation7 + $0x49c] sm:$0xf]  ;;  %v1994_v25 = vld [vmem:[#allocation7 + $0x68] sm:$0xf]  ;;  %v2718_v26 = vld [vmem:[#allocation7 + $0x70] sm:$0xf0] }
  0x80   :  { %1606 = vmatmul.bf16.vlgmr.msrb.gmra.mxu2 %v3117_v9  ;;  %v2115_v23 = vor.u32 %v2748_v17, %v2114_v15  ;;  %v2102_v27 = vld [vmem:[#allocation7 + $0x140] sm:$0xf]  ;;  %v2745_v30 = vld [vmem:[#allocation7 + $0x148] sm:$0xf0]  ;;  %v1946_v15 = vld [vmem:[#allocation7 + $0x8] sm:$0xf] }
  0x81   :  { %v2103_v36 = vor.u32 %v2745_v30, %v2102_v27  ;;  %v2781_v27 = vld [vmem:[#allocation7 + $0x268] sm:$0xf0]  ;;  %v2823_v30 = vld [vmem:[#allocation7 + $0x3b8] sm:$0xf0] }
  0x82   :  { %1625 = vmatpush.bf16.msra.mxu0 %v2495_v40  ;;  %1638 = vmatpush.bf16.msra.mxu1 %v2591_v41  ;;  %v2528_v40 = vld [vmem:[#allocation7 + $0x4a4] sm:$0xf0]  ;;  %v2875_v41 = vld [vmem:[#allocation7 + $0x55c] sm:$0xf] }
  0x83   :  { %1651 = vmatpush.bf16.msra.mxu2 %v2687_v45  ;;  %1614 = vmatpush.bf16.msrb.mxu3 %v2375_v52  ;;  %v2327_v45 = vor.u32 %v2800_v32, %v2324_v35  ;;  %v2531_v47 = vor.u32 %v2851_v39, %v2528_v40  ;;  %v2627_v52 = vor.u32 %v2875_v41, %v2624_v42  ;;  %v2769_v32 = vld [vmem:[#allocation7 + $0x208] sm:$0xf0]  ;;  %v2715_v39 = vld [vmem:[#allocation7 + $0x58] sm:$0xf0]  ;;  %v2090_v40 = vld [vmem:[#allocation7 + $0x128] sm:$0xf] }
  0x84   :  { %v1995_v35 = vor.u32 %v2718_v26, %v1994_v25  ;;  %v2742_v42 = vld [vmem:[#allocation7 + $0x130] sm:$0xf0]  ;;  %v2757_v25 = vld [vmem:[#allocation7 + $0x1a8] sm:$0xf0]  ;;  %v2246_v26 = vld [vmem:[#allocation7 + $0x260] sm:$0xf] }
  0x85   :  { %v2091_v49 = vor.u32 %v2742_v42, %v2090_v40  ;;  %v2234_v40 = vld [vmem:[#allocation7 + $0x248] sm:$0xf] }
  0x86   :  { %1626 = vmatpush.bf16.msra.mxu0 %v2483_v53  ;;  %1639 = vmatpush.bf16.msra.mxu1 %v2579_v56  ;;  %v2031_v53 = vor.u32 %v2727_v44, %v2030_v43  ;;  %v2516_v56 = vld [vmem:[#allocation7 + $0x48c] sm:$0xf0]  ;;  %v2186_v43 = vld [vmem:[#allocation7 + $0x1e8] sm:$0xf]  ;;  %v2766_v44 = vld [vmem:[#allocation7 + $0x1f0] sm:$0xf0] }
  0x87   :  { %1652 = vmatpush.bf16.msra.mxu2 %v2675_v61  ;;  %1615 = vmatpush.bf16.msrb.mxu3 %v2363_v3  ;;  %v2724_v61 = vld [vmem:[#allocation7 + $0xa0] sm:$0xf0]  ;;  %v2519_v3 = vor.u32 %v2848_v51, %v2516_v56  ;;  %v2187_v50 = vor.u32 %v2766_v44, %v2186_v43  ;;  %v1970_v51 = vld [vmem:[#allocation7 + $0x38] sm:$0xf] }
  0x88   :  { %v2019_v7 = vor.u32 %v2724_v61, %v2018_v60  ;;  %v2763_v60 = vld [vmem:[#allocation7 + $0x1d8] sm:$0xf0]  ;;  %v2270_v61 = vld [vmem:[#allocation7 + $0x290] sm:$0xf]  ;;  %v2402_v43 = vld [vmem:[#allocation7 + $0x398] sm:$0xf] }
  0x89   :  { %v2820_v44 = vld [vmem:[#allocation7 + $0x3a0] sm:$0xf0] }
  0x8a   :  { %1627 = vmatpush.bf16.msra.mxu0 %v2471_v4  ;;  %1640 = vmatpush.bf16.msra.mxu1 %v2567_v5  ;;  %v2318_v4 = vld [vmem:[#allocation7 + $0x2f0] sm:$0xf]  ;;  %v2799_v5 = vld [vmem:[#allocation7 + $0x2f8] sm:$0xf0] }
  0x8b   :  { %1653 = vmatpush.bf16.msra.mxu2 %v2663_v11  ;;  %1616 = vmatpush.bf16.msrb.mxu3 %v2351_v18  ;;  %v2223_v11 = vor.u32 %v2775_v1, %v2222_v0  ;;  %v2319_v16 = vor.u32 %v2799_v5, %v2318_v4  ;;  %v2210_v18 = vld [vmem:[#allocation7 + $0x218] sm:$0xf]  ;;  %v2175_v1 = vor.u32 %v2763_v60, %v2174_v59 }
  0x8c   :  { %v2066_v4 = vld [vmem:[#allocation7 + $0xf8] sm:$0xf]  ;;  %v2271_v5 = vor.u32 %v2787_v62, %v2270_v61  ;;  %v2403_v60 = vor.u32 %v2820_v44, %v2402_v43  ;;  %v2808_v43 = vld [vmem:[#allocation7 + $0x340] sm:$0xf0]  ;;  %v2462_v44 = vld [vmem:[#allocation7 + $0x410] sm:$0xf] }
  0x8e   :  { %1628 = vmatpush.bf16.msra.mxu0 %v2459_v19  ;;  %1641 = vmatpush.bf16.msra.mxu1 %v2555_v20  ;;  %v2772_v19 = vld [vmem:[#allocation7 + $0x220] sm:$0xf0]  ;;  %v2306_v20 = vld [vmem:[#allocation7 + $0x2d8] sm:$0xf] }
  0x8f   :  { %1654 = vmatpush.bf16.msra.mxu2 %v2651_v24  ;;  %1617 = vmatpush.bf16.msrb.mxu3 %v2339_v31  ;;  %v2211_v24 = vor.u32 %v2772_v19, %v2210_v18  ;;  %v2307_v28 = vor.u32 %v2796_v21, %v2306_v20  ;;  %v2198_v31 = vld [vmem:[#allocation7 + $0x200] sm:$0xf]  ;;  %v2706_v19 = vld [vmem:[#allocation7 + $0x10] sm:$0xf0]  ;;  %v2733_v21 = vld [vmem:[#allocation7 + $0xe8] sm:$0xf0] }
  0x90   :  { %v2199_v37 = vor.u32 %v2769_v32, %v2198_v31  ;;  %v2054_v20 = vld [vmem:[#allocation7 + $0xe0] sm:$0xf]  ;;  %v1947_v31 = vor.u32 %v2706_v19, %v1946_v15  ;;  %v2814_v15 = vld [vmem:[#allocation7 + $0x370] sm:$0xf0]  ;;  %v2841_v19 = vld [vmem:[#allocation7 + $0x448] sm:$0xf0] }
  0x91   :  { %v2055_v32 = vor.u32 %v2733_v21, %v2054_v20  ;;  %v2582_v20 = vld [vmem:[#allocation7 + $0x500] sm:$0xf]  ;;  %v2865_v21 = vld [vmem:[#allocation7 + $0x508] sm:$0xf0] }
  0x92   :  { %1629 = vmatpush.bf16.msra.mxu0 %v2447_v33  ;;  %1642 = vmatpush.bf16.msra.mxu1 %v2543_v34  ;;  %v2294_v33 = vld [vmem:[#allocation7 + $0x2c0] sm:$0xf]  ;;  %v2793_v34 = vld [vmem:[#allocation7 + $0x2c8] sm:$0xf0] }
  0x93   :  { %1655 = vmatpush.bf16.msra.mxu2 %v2639_v38  ;;  %1618 = vmatpush.bf16.msrb.mxu3 %v2327_v45  ;;  %v1982_v38 = vld [vmem:[#allocation7 + $0x50] sm:$0xf]  ;;  %v2295_v41 = vor.u32 %v2793_v34, %v2294_v33  ;;  %v2282_v45 = vld [vmem:[#allocation7 + $0x2a8] sm:$0xf] }
  0x94   :  { %v2042_v34 = vld [vmem:[#allocation7 + $0xc8] sm:$0xf] }
  0x96   :  { %1630 = vmatpush.bf16.msra.mxu0 %v2435_v46  ;;  %1643 = vmatpush.bf16.msra.mxu1 %v2531_v47  ;;  %v2790_v46 = vld [vmem:[#allocation7 + $0x2b0] sm:$0xf0]  ;;  %v1983_v47 = vor.u32 %v2715_v39, %v1982_v38 }
  0x97   :  { %1656 = vmatpush.bf16.msra.mxu2 %v2627_v52  ;;  %1663 = vmatpush.bf16.msra.mxu3 %v2031_v53  ;;  %v2712_v52 = vld [vmem:[#allocation7 + $0x40] sm:$0xf0]  ;;  %v2078_v53 = vld [vmem:[#allocation7 + $0x110] sm:$0xf]  ;;  %v2283_v56 = vor.u32 %v2790_v46, %v2282_v45  ;;  %v2754_v39 = vld [vmem:[#allocation7 + $0x190] sm:$0xf0] }
  0x98   :  { %1619 = vmatmul.bf16.vlgmr.msrb.gmra.mxu3 %v3124_v29  ;;  %v1971_v63 = vor.u32 %v2712_v52, %v1970_v51  ;;  %v2079_v0 = vor.u32 %v2739_v57, %v2078_v53  ;;  %v2510_v45 = vld [vmem:[#allocation7 + $0x470] sm:$0xf]  ;;  %v2847_v46 = vld [vmem:[#allocation7 + $0x478] sm:$0xf0] }
  0x99   :  { %v2702_v53 = vld [vmem:[#allocation7 + $0x5f0] sm:$0xf]  ;;  %v2511_v61 = vor.u32 %v2847_v46, %v2510_v45  ;;  %v2835_v46 = vld [vmem:[#allocation7 + $0x418] sm:$0xf0] }
  0x9a   :  { %1631 = vmatpush.bf16.msra.mxu0 %v2423_v2  ;;  %1644 = vmatpush.bf16.msra.mxu1 %v2519_v3  ;;  %v1958_v2 = vld [vmem:[#allocation7 + $0x20] sm:$0xf]  ;;  %v2709_v3 = vld [vmem:[#allocation7 + $0x28] sm:$0xf0] }
  0x9b   :  { %1657 = vmatpush.bf16.msra.mxu2 %v2615_v6  ;;  %1664 = vmatpush.bf16.msra.mxu3 %v2019_v7  ;;  %v2736_v6 = vld [vmem:[#allocation7 + $0x100] sm:$0xf0]  ;;  %v2162_v7 = vld [vmem:[#allocation7 + $0x1b8] sm:$0xf]  ;;  %v1959_v14 = vor.u32 %v2709_v3, %v1958_v2 }
  0x9c   :  { %v2067_v17 = vor.u32 %v2736_v6, %v2066_v4  ;;  %v2844_v3 = vld [vmem:[#allocation7 + $0x460] sm:$0xf0]  ;;  %v2594_v4 = vld [vmem:[#allocation7 + $0x518] sm:$0xf] }
  0x9d   :  { %1632 = vmatmul.bf16.vlgmr.msra.gmra.mxu0 %v3127_v54  ;;  %1645 = vmatmul.bf16.vlgmr.msra.gmra.mxu1 %v3131_v58  ;;  %v2690_v6 = vld [vmem:[#allocation7 + $0x5d8] sm:$0xf] }
  0x9e   :  { %1676 = vmatpush.bf16.msrb.mxu0 %v2127_v10  ;;  %1689 = vmatpush.bf16.msrb.mxu1 %v2223_v11  ;;  %v2760_v10 = vld [vmem:[#allocation7 + $0x1c0] sm:$0xf0]  ;;  %v2258_v11 = vld [vmem:[#allocation7 + $0x278] sm:$0xf] }
  0x9f   :  { %1702 = vmatpush.bf16.msrb.mxu2 %v2319_v16  ;;  %1665 = vmatpush.bf16.msra.mxu3 %v2007_v22  ;;  %v3144_v16 = vpop.f32.mrf.mxu0  ;;  %v2163_v18 = vor.u32 %v2760_v10, %v2162_v7  ;;  %v2892_v7 = vld [vmem:[#allocation7 + $0x5e0] sm:$0xf0] }
  0xa0   :  { %1658 = vmatmul.bf16.vlgmr.msra.gmra.mxu2 %v3129_v55 }
  0xa1   :  { %v3146_v22 = vpop.f32.mrf.mxu1 }
  0xa2   :  { %1677 = vmatpush.bf16.msrb.mxu0 %v2115_v23  ;;  %1690 = vmatpush.bf16.msrb.mxu1 %v2211_v24  ;;  %v2259_v23 = vor.u32 %v2784_v13, %v2258_v11  ;;  %v2150_v24 = vld [vmem:[#allocation7 + $0x1a0] sm:$0xf] }
  0xa3   :  { %1703 = vmatpush.bf16.msrb.mxu2 %v2307_v28  ;;  %1666 = vmatpush.bf16.msra.mxu3 %v1995_v35  ;;  %v2414_v28 = vld [vmem:[#allocation7 + $0x3b0] sm:$0xf]  ;;  %v2151_v33 = vor.u32 %v2757_v25, %v2150_v24  ;;  %v2730_v35 = vld [vmem:[#allocation7 + $0xd0] sm:$0xf0]  ;;  %v2889_v24 = vld [vmem:[#allocation7 + $0x5c8] sm:$0xf0] }
  0xa4   :  { %v2415_v38 = vor.u32 %v2823_v30, %v2414_v28  ;;  %v3148_v42 = vpop.f32.mrf.mxu2  ;;  %v2043_v51 = vor.u32 %v2730_v35, %v2042_v34  ;;  %v2366_v28 = vld [vmem:[#allocation7 + $0x350] sm:$0xf]  ;;  %v2811_v30 = vld [vmem:[#allocation7 + $0x358] sm:$0xf0]  ;;  %v2862_v34 = vld [vmem:[#allocation7 + $0x4f0] sm:$0xf0] }
  0xa5   :  { %v2666_v35 = vld [vmem:[#allocation7 + $0x5a8] sm:$0xf] }
  0xa6   :  { %1678 = vmatpush.bf16.msrb.mxu0 %v2103_v36  ;;  %1691 = vmatpush.bf16.msrb.mxu1 %v2199_v37  ;;  %v2138_v36 = vld [vmem:[#allocation7 + $0x188] sm:$0xf]  ;;  %v2247_v37 = vor.u32 %v2781_v27, %v2246_v26  ;;  %v2583_v27 = vor.u32 %v2865_v21, %v2582_v20  ;;  %v2630_v20 = vld [vmem:[#allocation7 + $0x560] sm:$0xf]  ;;  %v2877_v21 = vld [vmem:[#allocation7 + $0x568] sm:$0xf0] }
  0xa7   :  { %1704 = vmatpush.bf16.msrb.mxu2 %v2295_v41  ;;  %1667 = vmatpush.bf16.msra.mxu3 %v1983_v47  ;;  %v2778_v41 = vld [vmem:[#allocation7 + $0x250] sm:$0xf0]  ;;  %v2606_v47 = vld [vmem:[#allocation7 + $0x530] sm:$0xf]  ;;  %v2139_v52 = vor.u32 %v2754_v39, %v2138_v36 }
  0xa8   :  { %v2235_v59 = vor.u32 %v2778_v41, %v2234_v40  ;;  %v2354_v41 = vld [vmem:[#allocation7 + $0x338] sm:$0xf] }
  0xa9   :  { %v416_v57 = vpop.f32.mrf.mxu1 }
  0xaa   :  { %1679 = vmatpush.bf16.msrb.mxu0 %v2091_v49  ;;  %1692 = vmatpush.bf16.msrb.mxu1 %v2187_v50  ;;  %v2871_v49 = vld [vmem:[#allocation7 + $0x538] sm:$0xf0]  ;;  %v403_v50 = vpop.f32.mrf.mxu0  ;;  %v2342_v57 = vld [vmem:[#allocation7 + $0x320] sm:$0xf] }
  0xab   :  { %1705 = vmatpush.bf16.msrb.mxu2 %v2283_v56  ;;  %1668 = vmatpush.bf16.msra.mxu3 %v1971_v63  ;;  %v2895_v56 = vld [vmem:[#allocation7 + $0x5f8] sm:$0xf0]  ;;  %v2607_v62 = vor.u32 %v2871_v49, %v2606_v47  ;;  %v2390_v63 = vld [vmem:[#allocation7 + $0x380] sm:$0xf]  ;;  %v2558_v47 = vld [vmem:[#allocation7 + $0x4d0] sm:$0xf] }
  0xac   :  { %v2703_v2 = vor.u32 %v2895_v56, %v2702_v53  ;;  %v429_v11 = vpop.f32.mrf.mxu2  ;;  %v2859_v49 = vld [vmem:[#allocation7 + $0x4d8] sm:$0xf0]  ;;  %v2654_v50 = vld [vmem:[#allocation7 + $0x590] sm:$0xf]  ;;  %v2463_v53 = vor.u32 %v2835_v46, %v2462_v44 }
  0xad   :  { %v2559_v56 = vor.u32 %v2859_v49, %v2558_v47 }
  0xae   :  { %1680 = vmatpush.bf16.msrb.mxu0 %v2079_v0  ;;  %1693 = vmatpush.bf16.msrb.mxu1 %v2175_v1  ;;  %v2817_v0 = vld [vmem:[#allocation7 + $0x388] sm:$0xf0]  ;;  %v2498_v1 = vld [vmem:[#allocation7 + $0x458] sm:$0xf] }
  0xaf   :  { %1706 = vmatpush.bf16.msrb.mxu2 %v2271_v5  ;;  %1669 = vmatpush.bf16.msra.mxu3 %v1959_v14  ;;  %v2868_v5 = vld [vmem:[#allocation7 + $0x520] sm:$0xf0]  ;;  %v2391_v10 = vor.u32 %v2817_v0, %v2390_v63  ;;  %v2378_v14 = vld [vmem:[#allocation7 + $0x368] sm:$0xf]  ;;  %v2546_v0 = vld [vmem:[#allocation7 + $0x4b8] sm:$0xf] }
  0xb0   :  { %v2595_v13 = vor.u32 %v2868_v5, %v2594_v4  ;;  %v2379_v25 = vor.u32 %v2814_v15, %v2378_v14  ;;  %v2832_v63 = vld [vmem:[#allocation7 + $0x400] sm:$0xf0]  ;;  %v2438_v14 = vld [vmem:[#allocation7 + $0x3e0] sm:$0xf] }
  0xb2   :  { %1681 = vmatpush.bf16.msrb.mxu0 %v2067_v17  ;;  %1694 = vmatpush.bf16.msrb.mxu1 %v2163_v18  ;;  %v2486_v17 = vld [vmem:[#allocation7 + $0x440] sm:$0xf]  ;;  %v2691_v18 = vor.u32 %v2892_v7, %v2690_v6 }
  0xb3   :  { %1707 = vmatpush.bf16.msrb.mxu2 %v2259_v23  ;;  %1670 = vmatpush.bf16.msra.mxu3 %v1947_v31  ;;  %v2678_v23 = vld [vmem:[#allocation7 + $0x5c0] sm:$0xf]  ;;  %v2487_v26 = vor.u32 %v2841_v19, %v2486_v17  ;;  %v2474_v31 = vld [vmem:[#allocation7 + $0x428] sm:$0xf]  ;;  %v2829_v17 = vld [vmem:[#allocation7 + $0x3e8] sm:$0xf0] }
  0xb4   :  { %v2853_v19 = vld [vmem:[#allocation7 + $0x4a8] sm:$0xf0] }
  0xb6   :  { %1682 = vmatpush.bf16.msrb.mxu0 %v2055_v32  ;;  %1695 = vmatpush.bf16.msrb.mxu1 %v2151_v33  ;;  %v2838_v32 = vld [vmem:[#allocation7 + $0x430] sm:$0xf0]  ;;  %v2570_v33 = vld [vmem:[#allocation7 + $0x4e8] sm:$0xf] }
  0xb7   :  { %1708 = vmatpush.bf16.msrb.mxu2 %v2247_v37  ;;  %1715 = vmatpush.bf16.msrb.mxu3 %v2415_v38  ;;  %v2475_v39 = vor.u32 %v2838_v32, %v2474_v31  ;;  %v2571_v40 = vor.u32 %v2862_v34, %v2570_v33  ;;  %v2850_v31 = vld [vmem:[#allocation7 + $0x490] sm:$0xf0]  ;;  %v2618_v32 = vld [vmem:[#allocation7 + $0x548] sm:$0xf] }
  0xb8   :  { %1671 = vmatmul.bf16.vlgmr.msra.gmra.mxu3 %v3112_v48  ;;  %v2499_v48 = vor.u32 %v2844_v3, %v2498_v1  ;;  %v2856_v1 = vld [vmem:[#allocation7 + $0x4c0] sm:$0xf0]  ;;  %v2874_v33 = vld [vmem:[#allocation7 + $0x550] sm:$0xf0] }
  0xb9   :  { %v2880_v3 = vld [vmem:[#allocation7 + $0x580] sm:$0xf0]  ;;  %v2547_v11 = vor.u32 %v2856_v1, %v2546_v0 }
  0xba   :  { %1683 = vmatpush.bf16.msrb.mxu0 %v2043_v51  ;;  %1696 = vmatpush.bf16.msrb.mxu1 %v2139_v52  ;;  %v3154_v36 = vpop.f32.mrf.mxu0  ;;  %v3158_v38 = vpop.f32.mrf.mxu1  ;;  %v2883_v51 = vld [vmem:[#allocation7 + $0x598] sm:$0xf0]  ;;  %v2355_v52 = vor.u32 %v2808_v43, %v2354_v41 }
  0xbb   :  { %1709 = vmatpush.bf16.msrb.mxu2 %v2235_v59  ;;  %1716 = vmatpush.bf16.msrb.mxu3 %v2403_v60  ;;  %v3156_v37 = vpop.f32.mrf.mxu3  ;;  %v2805_v59 = vld [vmem:[#allocation7 + $0x328] sm:$0xf0]  ;;  %v2450_v60 = vld [vmem:[#allocation7 + $0x3f8] sm:$0xf] }
  0xbc   :  { %v2343_v5 = vor.u32 %v2805_v59, %v2342_v57  ;;  %v1465_v34 = vadd.f32 %v3156_v37, %v3144_v16 }
  0xbd   :  { %1684 = vmatmul.bf16.vlgmr.msrb.gmra.mxu0 %v3115_v8  ;;  %1697 = vmatmul.bf16.vlgmr.msrb.gmra.mxu1 %v3119_v12  ;;  %v2679_v8 = vor.u32 %v2889_v24, %v2678_v23  ;;  %v2367_v12 = vor.u32 %v2811_v30, %v2366_v28  ;;  %v2439_v24 = vor.u32 %v2829_v17, %v2438_v14  ;;  %v2826_v28 = vld [vmem:[#allocation7 + $0x3d0] sm:$0xf0]  ;;  %v2522_v30 = vld [vmem:[#allocation7 + $0x488] sm:$0xf] }
  0xbe   :  { %1728 = vmatpush.bf16.msra.mxu0 %v2511_v61  ;;  %1741 = vmatpush.bf16.msra.mxu1 %v2607_v62  ;;  %v2655_v61 = vor.u32 %v2883_v51, %v2654_v50 }
  0xbf   :  { %1754 = vmatpush.bf16.msra.mxu2 %v2703_v2  ;;  %1717 = vmatpush.bf16.msrb.mxu3 %v2391_v10  ;;  %v2642_v2 = vld [vmem:[#allocation7 + $0x578] sm:$0xf]  ;;  %v2451_v10 = vor.u32 %v2832_v63, %v2450_v60 }
  0xc0   :  { %1710 = vmatmul.bf16.vlgmr.msrb.gmra.mxu2 %v3117_v9  ;;  %v2886_v9 = vld [vmem:[#allocation7 + $0x5b0] sm:$0xf0]  ;;  %v2643_v15 = vor.u32 %v2880_v3, %v2642_v2 }
  0xc1   :  { %v2667_v45 = vor.u32 %v2886_v9, %v2666_v35  ;;  %v2523_v9 = vor.u32 %v2850_v31, %v2522_v30 }
  0xc2   :  { %1729 = vmatpush.bf16.msra.mxu0 %v2499_v48  ;;  %1742 = vmatpush.bf16.msra.mxu1 %v2595_v13  ;;  %v1479_v4 = vpop.f32.mrf.mxu0  ;;  %v1492_v7 = vpop.f32.mrf.mxu1  ;;  %v2330_v48 = vld [vmem:[#allocation7 + $0x308] sm:$0xf]  ;;  %v2802_v13 = vld [vmem:[#allocation7 + $0x310] sm:$0xf0] }
  0xc3   :  { %1755 = vmatpush.bf16.msra.mxu2 %v2691_v18  ;;  %1718 = vmatpush.bf16.msrb.mxu3 %v2379_v25  ;;  %v1503_v62 = vpop.f32.mrf.mxu2  ;;  %v1466_v6 = vpop.f32.mrf.mxu3  ;;  %v2534_v18 = vld [vmem:[#allocation7 + $0x4a0] sm:$0xf]  ;;  %v2331_v23 = vor.u32 %v2802_v13, %v2330_v48 }
  0xc4   :  { %v2535_v25 = vor.u32 %v2853_v19, %v2534_v18 }
  0xc6   :  { %1730 = vmatpush.bf16.msra.mxu0 %v2487_v26  ;;  %1743 = vmatpush.bf16.msra.mxu1 %v2583_v27  ;;  %v2426_v26 = vld [vmem:[#allocation7 + $0x3c8] sm:$0xf]  ;;  %v2631_v27 = vor.u32 %v2877_v21, %v2630_v20 }
  0xc7   :  { %1756 = vmatpush.bf16.msra.mxu2 %v2679_v8  ;;  %1719 = vmatpush.bf16.msrb.mxu3 %v2367_v12  ;;  %v2427_v35 = vor.u32 %v2826_v28, %v2426_v26  ;;  %v2619_v12 = vor.u32 %v2874_v33, %v2618_v32 }
  0xca   :  { %1731 = vmatpush.bf16.msra.mxu0 %v2475_v39  ;;  %1744 = vmatpush.bf16.msra.mxu1 %v2571_v40  ;;  %v1478_v39 = vadd.f32 %v3154_v36, %v1465_v34 }
  0xcb   :  { %1757 = vmatpush.bf16.msra.mxu2 %v2667_v45  ;;  %1720 = vmatpush.bf16.msrb.mxu3 %v2355_v52  ;;  %v1505_v8 = vpop.f32.mrf.mxu2 }
  0xcc   :  { %v1491_v40 = vadd.f32 %v3158_v38, %v1478_v39 }
  0xce   :  { %1732 = vmatpush.bf16.msra.mxu0 %v2463_v53  ;;  %1745 = vmatpush.bf16.msra.mxu1 %v2559_v56  ;;  %v1504_v16 = vadd.f32 %v1503_v62, %v1491_v40 }
  0xcf   :  { %1758 = vmatpush.bf16.msra.mxu2 %v2655_v61  ;;  %1721 = vmatpush.bf16.msrb.mxu3 %v2343_v5 }
  0xd2   :  { %1733 = vmatpush.bf16.msra.mxu0 %v2451_v10  ;;  %1746 = vmatpush.bf16.msra.mxu1 %v2547_v11 }
  0xd3   :  { %1759 = vmatpush.bf16.msra.mxu2 %v2643_v15  ;;  %1722 = vmatpush.bf16.msrb.mxu3 %v2331_v23 }
  0xd6   :  { %1734 = vmatpush.bf16.msra.mxu0 %v2439_v24  ;;  %1747 = vmatpush.bf16.msra.mxu1 %v2535_v25 }
  0xd7   :  { %1760 = vmatpush.bf16.msra.mxu2 %v2631_v27  ;;  %1723 = vmatmul.bf16.vlgmr.msrb.gmra.mxu3 %v3124_v29  ;;  %v3171_v29 = vld [vmem:[%s3212_s4] sm:$0x7]  ;;  %s3063_s4 = smov [#allocation10]  }
  0xd8   :  { %v1770_v11 = vperm.slane %v3171_v29, 1  ;;  %v1771_v40 = vperm.slane %v3171_v29, 2  ;;  %s1919_s13 = sshll.u32 %s3063_s4, 4  ;;  %s1920_s13 = int_to_ptr.vmem [resolvable:$true] %s1919_s13 }
  0xda   :  { %1735 = vmatpush.bf16.msra.mxu0 %v2427_v35  ;;  %1748 = vmatpush.bf16.msra.mxu1 %v2523_v9  ;;  %v1529_v37 = vpop.f32.mrf.mxu0  ;;  %v1542_v43 = vpop.f32.mrf.mxu1 }
  0xdb   :  { %1761 = vmatpush.bf16.msra.mxu2 %v2619_v12  ;;  %v1516_v41 = vpop.f32.mrf.mxu3 }
  0xdc   :  { %v1517_v44 = vadd.f32 %v1516_v41, %v1504_v16 }
  0xdd   :  { %1736 = vmatmul.bf16.vlgmr.msra.gmra.mxu0 %v3127_v54  ;;  %1749 = vmatmul.bf16.vlgmr.msra.gmra.mxu1 %v3131_v58  ;;  %v1769_v54 = vperm.slane %v3171_v29, 0 }
  0xde   :  { %1762 = vmatmul.bf16.vlgmr.msra.gmra.mxu2 %v3129_v55  ;;  %v1530_v36 = vadd.f32 %v1529_v37, %v1517_v44 }
  0xe0   :  { %v1543_v45 = vadd.f32 %v1542_v43, %v1530_v36 }
  0xe2   :  { %v1531_v47 = vpop.f32.mrf.mxu0  ;;  %v1544_v55 = vpop.f32.mrf.mxu1 }
  0xe3   :  { %v1555_v46 = vpop.f32.mrf.mxu2  ;;  %v1518_v38 = vpop.f32.mrf.mxu3 }
  0xe4   :  { %v1556_v58 = vadd.f32 %v1555_v46, %v1543_v45 }
  0xe6   :  { %v1775_v49 = vadd.f32 %v1769_v54, %v1556_v58 }
  0xe8   :  { %v1782_v50 = vsel %vm1781_vm2, %v1775_v49, -inf }
  0xe9   :  { %1783 = vmax.xlane.f32.xlu0 %v1782_v50 }
  0xeb   :  { %v1557_v51 = vpop.f32.mrf.mxu2 }
  0xfa   :  { %v1581_v52 = vpop.f32.mrf.mxu0  ;;  %v1594_v56 = vpop.f32.mrf.mxu1 }
  0xfb   :  { %v1568_v53 = vpop.f32.mrf.mxu3 }
  0xfc   :  { %v1569_v63 = vadd.f32 %v1568_v53, %v3146_v22 }
  0xfe   :  { %v1582_v0 = vadd.f32 %v1581_v52, %v1569_v63 }
 0x100   :  { %v1595_v1 = vadd.f32 %v1594_v56, %v1582_v0  ;;  %v1778_v0 = vlaneseq }
 0x102   :  { %v1583_v59 = vpop.f32.mrf.mxu0  ;;  %v1596_v61 = vpop.f32.mrf.mxu1 }
 0x103   :  { %v1607_v57 = vpop.f32.mrf.mxu2  ;;  %v1570_v60 = vpop.f32.mrf.mxu3 }
 0x104   :  { %v1608_v2 = vadd.f32 %v1607_v57, %v1595_v1 }
 0x10b   :  { %v1609_v62 = vpop.f32.mrf.mxu2 }
 0x11a   :  { %v1633_v3 = vpop.f32.mrf.mxu0  ;;  %v1646_v5 = vpop.f32.mrf.mxu1 }
 0x11b   :  { %v1620_v4 = vpop.f32.mrf.mxu3 }
 0x11c   :  { %v1621_v6 = vadd.f32 %v1620_v4, %v1608_v2 }
 0x11e   :  { %v1634_v7 = vadd.f32 %v1633_v3, %v1621_v6 }
 0x120   :  { %v1647_v10 = vadd.f32 %v1646_v5, %v1634_v7  ;;  %v3187_v5 = vand.u32 127, %v1778_v0 }
 0x122   :  { %v1635_v14 = vpop.f32.mrf.mxu0  ;;  %v1648_v17 = vpop.f32.mrf.mxu1  ;;  %vm1780_vm7 = vcmp.lt.s32.totalorder %v3187_v5, 10 }
 0x123   :  { %v1659_v48 = vpop.f32.mrf.mxu2  ;;  %v1622_v15 = vpop.f32.mrf.mxu3 }
 0x124   :  { %v1660_v13 = vadd.f32 %v1659_v48, %v1647_v10 }
 0x126   :  { %v1776_v18 = vadd.f32 %v1770_v11, %v1660_v13 }
 0x128   :  { %v1819_v19 = vsel %vm1781_vm2, %v1776_v18, -inf }
 0x129   :  { %1820 = vmax.xlane.f32.xlu0 %v1819_v19 }
 0x12b   :  { %v1661_v22 = vpop.f32.mrf.mxu2 }
 0x13a   :  { %v1685_v20 = vpop.f32.mrf.mxu0  ;;  %v1698_v23 = vpop.f32.mrf.mxu1 }
 0x13b   :  { %v1672_v21 = vpop.f32.mrf.mxu3 }
 0x13c   :  { %v1673_v30 = vadd.f32 %v1672_v21, %v3148_v42 }
 0x13e   :  { %v1686_v31 = vadd.f32 %v1685_v20, %v1673_v30 }
 0x140   :  { %v1699_v8 = vadd.f32 %v1698_v23, %v1686_v31 }
 0x142   :  { %v1687_v25 = vpop.f32.mrf.mxu0  ;;  %v1700_v27 = vpop.f32.mrf.mxu1 }
 0x143   :  { %v1711_v24 = vpop.f32.mrf.mxu2  ;;  %v1674_v26 = vpop.f32.mrf.mxu3 }
 0x144   :  { %v1712_v32 = vadd.f32 %v1711_v24, %v1699_v8 }
 0x14b   :  { %v1713_v28 = vpop.f32.mrf.mxu2 }
 0x15a   :  { %v1737_v33 = vpop.f32.mrf.mxu0  ;;  %v1750_v34 = vpop.f32.mrf.mxu1 }
 0x15b   :  { %v1724_v35 = vpop.f32.mrf.mxu3 }
 0x15c   :  { %v1725_v9 = vadd.f32 %v1724_v35, %v1712_v32  ;;  %v1784_v36 = vpop.xlane.xlu0 %1783 }
 0x15d   :  { %v1785_v45 = vsub.f32 %v1775_v49, %v1784_v36 }
 0x15e   :  { %v1738_v12 = vadd.f32 %v1737_v33, %v1725_v9 }
 0x15f   :  { %v1786_v42 = vmul.f32 1.442695, %v1785_v45 }
 0x160   :  { %v1751_v39 = vadd.f32 %v1750_v34, %v1738_v12 }
 0x161   :  { %v1763_v16 = vpop.f32.mrf.mxu2  ;;  %2903 = vpow2.f32 %v1786_v42 }
 0x162   :  { %v1764_v37 = vadd.f32 %v1763_v16, %v1751_v39  ;;  %v1739_v41 = vpop.f32.mrf.mxu0  ;;  %v1752_v43 = vpop.f32.mrf.mxu1 }
 0x163   :  { %v1726_v44 = vpop.f32.mrf.mxu3 }
 0x164   :  { %v1777_v54 = vadd.f32 %v1771_v40, %v1764_v37 }
 0x166   :  { %v1858_v46 = vsel %vm1781_vm2, %v1777_v54, -inf }
 0x167   :  { %1859 = vmax.xlane.f32.xlu1 %v1858_v46  ;;  %v2904_v47 = vpop.eup %2903 }
 0x168   :  { %v1788_v38 = vsel %vm1781_vm2, %v2904_v47, 0.0 }
 0x169   :  { %v1765_v58 = vpop.f32.mrf.mxu2 }
 0x16f   :  { %1789 = vadd.xlane.f32.xlu1 %v1788_v38 }
 0x19c   :  { %v1821_v55 = vpop.xlane.xlu0 %1820 }
 0x19d   :  { %v1822_v29 = vsub.f32 %v1776_v18, %v1821_v55 }
 0x19f   :  { %v1823_v50 = vmul.f32 1.442695, %v1822_v29 }
 0x1a1   :  { %2905 = vpow2.f32 %v1823_v50 }
 0x1a7   :  { %v2906_v51 = vpop.eup %2905 }
 0x1a8   :  { %v1825_v52 = vsel %vm1781_vm2, %v2906_v51, 0.0 }
 0x1a9   :  { %1826 = vadd.xlane.f32.xlu2 %v1825_v52 }
 0x1da   :  { %v1860_v49 = vpop.xlane.xlu1 %1859 }
 0x1db   :  { %v1861_v53 = vsub.f32 %v1777_v54, %v1860_v49 }
 0x1dd   :  { %v1862_v56 = vmul.f32 1.442695, %v1861_v53 }
 0x1df   :  { %2907 = vpow2.f32 %v1862_v56 }
 0x1e2   :  { %v1790_v57 = vpop.xlane.xlu1 %1789 }
 0x1e3   :  { %2909 = vrcp.f32 %v1790_v57  ;;  %v1802_v1 = vand.u32 2147483648, %v1790_v57  ;;  %v1800_v3 = vand.u32 2147483647, %v1790_v57  ;;  %vm1796_vm4 = vweird.f32 %v1790_v57 }
 0x1e5   :  { %v3183_v59 = vpop.eup %2907  ;;  %v1803_v6 = vor.u32 1.1754944e-38, %v1802_v1  ;;  %vm1801_vm6 = vcmp.eq.f32.partialorder %v1800_v3, 8.507059e+37 }
 0x1e6   :  { %v1864_v60 = vsel %vm1781_vm2, %v3183_v59, 0.0 }
 0x1e7   :  { %1865 = vadd.xlane.f32.xlu2 %v1864_v60 }
 0x1e9   :  { %v2910_v61 = vpop.eup %2909 }
 0x1ea   :  { %v1792_v62 = vmul.f32 %v2910_v61, %v1790_v57  ;;  %vm1797_vm3 = vweird.f32 %v2910_v61 }
 0x1eb   :  { %vm1798_vm5 = vmor %vm1796_vm4, %vm1797_vm3 }
 0x1ec   :  { %v1793_v63 = vsub.f32 1.0, %v1792_v62 }
 0x1ee   :  { %v1794_v2 = vmul.f32 %v2910_v61, %v1793_v63 }
 0x1f0   :  { %v1795_v4 = vadd.f32 %v2910_v61, %v1794_v2 }
 0x1f2   :  { %v1799_v7 = vsel %vm1798_vm5, %v2910_v61, %v1795_v4 }
 0x1f3   :  { %v1804_v10 = vsel %vm1801_vm6, %v1803_v6, %v1799_v7 }
 0x1f4   :  { %v1805_v11 = vmul.f32 %v2904_v47, %v1804_v10 }
 0x1f6   :  { %vm1806_vm8 = vcmp.eq.f32.partialorder %v1805_v11, 0.0 }
 0x1f7   :  { %vm1807_vm9 = vmand %vm1806_vm8, %vm1780_vm7 }
 0x1f8   :  { %v3192_v48 = vsel %vm1807_vm9, 1e-07, %v1805_v11 }
 0x1f9   :  { %v1809_v13 = vadd.f32 1e-14, %v3192_v48 }
 0x1fb   :  { %2911 = vlog2.f32 %v1809_v13 }
 0x201   :  { %v2912_v14 = vpop.eup %2911 }
 0x202   :  { %v1811_v15 = vmul.f32 0.6931472, %v2912_v14 }
 0x204   :  { %v1812_v17 = vsub.f32 0.0, %v1811_v15 }
 0x206   :  { %v1813_v18 = vmul.f32 %v1812_v17, %v3192_v48 }
 0x208   :  { %v1814_v19 = vsel %vm1781_vm2, %v1813_v18, 0.0 }
 0x209   :  { %1815 = vadd.xlane.f32.xlu0 %v1814_v19 }
 0x21c   :  { %v1827_v22 = vpop.xlane.xlu2 %1826 }
 0x21d   :  { %2913 = vrcp.f32 %v1827_v22  ;;  %v1839_v24 = vand.u32 2147483648, %v1827_v22  ;;  %v1837_v26 = vand.u32 2147483647, %v1827_v22  ;;  %vm1833_vm11 = vweird.f32 %v1827_v22 }
 0x21f   :  { %v1840_v28 = vor.u32 1.1754944e-38, %v1839_v24  ;;  %vm1838_vm13 = vcmp.eq.f32.partialorder %v1837_v26, 8.507059e+37 }
 0x223   :  { %v2914_v20 = vpop.eup %2913 }
 0x224   :  { %v1829_v21 = vmul.f32 %v2914_v20, %v1827_v22  ;;  %vm1834_vm10 = vweird.f32 %v2914_v20 }
 0x225   :  { %vm1835_vm12 = vmor %vm1833_vm11, %vm1834_vm10 }
 0x226   :  { %v1830_v23 = vsub.f32 1.0, %v1829_v21 }
 0x228   :  { %v1831_v25 = vmul.f32 %v2914_v20, %v1830_v23 }
 0x22a   :  { %v1832_v27 = vadd.f32 %v2914_v20, %v1831_v25 }
 0x22c   :  { %v1836_v30 = vsel %vm1835_vm12, %v2914_v20, %v1832_v27 }
 0x22d   :  { %v1841_v31 = vsel %vm1838_vm13, %v1840_v28, %v1836_v30 }
 0x22e   :  { %v1842_v8 = vmul.f32 %v2906_v51, %v1841_v31 }
 0x230   :  { %vm1843_vm14 = vcmp.eq.f32.partialorder %v1842_v8, 0.0 }
 0x231   :  { %vm1844_vm15 = vmand %vm1843_vm14, %vm1780_vm7 }
 0x232   :  { %v1845_v32 = vsel %vm1844_vm15, 1e-07, %v1842_v8 }
 0x233   :  { %v1846_v33 = vadd.f32 1e-14, %v1845_v32 }
 0x235   :  { %2915 = vlog2.f32 %v1846_v33 }
 0x23b   :  { %v2916_v34 = vpop.eup %2915 }
 0x23c   :  { %v1848_v35 = vmul.f32 0.6931472, %v2916_v34 }
 0x23e   :  { %v1849_v9 = vsub.f32 0.0, %v1848_v35 }
 0x240   :  { %v1850_v12 = vmul.f32 %v1849_v9, %v1845_v32 }
 0x242   :  { %v1851_v39 = vsel %vm1781_vm2, %v1850_v12, 0.0 }
 0x243   :  { %1852 = vadd.xlane.f32.xlu1 %v1851_v39 }
 0x25a   :  { %v1866_v40 = vpop.xlane.xlu2 %1865 }
 0x25b   :  { %2917 = vrcp.f32 %v1866_v40  ;;  %v1878_v43 = vand.u32 2147483648, %v1866_v40  ;;  %v1876_v36 = vand.u32 2147483647, %v1866_v40  ;;  %vm1872_vm1 = vweird.f32 %v1866_v40 }
 0x25d   :  { %v1879_v54 = vor.u32 1.1754944e-38, %v1878_v43  ;;  %vm1877_vm4 = vcmp.eq.f32.partialorder %v1876_v36, 8.507059e+37 }
 0x261   :  { %v2918_v16 = vpop.eup %2917 }
 0x262   :  { %v1868_v37 = vmul.f32 %v2918_v16, %v1866_v40  ;;  %vm1873_vm0 = vweird.f32 %v2918_v16 }
 0x263   :  { %vm1874_vm3 = vmor %vm1872_vm1, %vm1873_vm0 }
 0x264   :  { %v1869_v41 = vsub.f32 1.0, %v1868_v37 }
 0x266   :  { %v1870_v44 = vmul.f32 %v2918_v16, %v1869_v41 }
 0x268   :  { %v1871_v45 = vadd.f32 %v2918_v16, %v1870_v44 }
 0x26a   :  { %v1875_v42 = vsel %vm1874_vm3, %v2918_v16, %v1871_v45 }
 0x26b   :  { %v1880_v46 = vsel %vm1877_vm4, %v1879_v54, %v1875_v42 }
 0x26c   :  { %v1881_v58 = vmul.f32 %v3183_v59, %v1880_v46 }
 0x26e   :  { %vm1882_vm5 = vcmp.eq.f32.partialorder %v1881_v58, 0.0 }
 0x26f   :  { %vm1883_vm6 = vmand %vm1882_vm5, %vm1780_vm7 }
 0x270   :  { %v1884_v47 = vsel %vm1883_vm6, 1e-07, %v1881_v58 }
 0x271   :  { %v1885_v38 = vadd.f32 1e-14, %v1884_v47 }
 0x273   :  { %2919 = vlog2.f32 %v1885_v38 }
 0x279   :  { %v2920_v55 = vpop.eup %2919 }
 0x27a   :  { %v1887_v29 = vmul.f32 0.6931472, %v2920_v55 }
 0x27c   :  { %v1888_v50 = vsub.f32 0.0, %v1887_v29  ;;  %v1816_v53 = vpop.xlane.xlu0 %1815 }
 0x27e   :  { %v1889_v51 = vmul.f32 %v1888_v50, %v1884_v47 }
 0x280   :  { %v1890_v52 = vsel %vm1781_vm2, %v1889_v51, 0.0 }
 0x281   :  { %1891 = vadd.xlane.f32.xlu2 %v1890_v52 }
 0x2b6   :  { %v1853_v49 = vpop.xlane.xlu1 %1852 }
 0x2b7   :  { %2921 = vrcp.f32 %v1853_v49 }
 0x2b8   :  { %2923 = vrcp.f32 %v1816_v53 }
 0x2bd   :  { %v2922_v57 = vpop.eup %2921 }
 0x2be   :  { %v2924_v59 = vpop.eup %2923  ;;  %v1855_v1 = vmul.f32 %v2922_v57, %v1845_v32 }
 0x2bf   :  { %v1857_v60 = vadd.f32 %v2924_v59, %v2922_v57  ;;  %v1818_v3 = vmul.f32 %v2924_v59, %v3192_v48 }
 0x2c1   :  { %v1856_v10 = vadd.f32 %v1855_v1, %v1818_v3 }
 0x2f4   :  { %v1892_v56 = vpop.xlane.xlu2 %1891 }
 0x2f5   :  { %2925 = vrcp.f32 %v1892_v56 }
 0x2fb   :  { %v2926_v61 = vpop.eup %2925 }
 0x2fc   :  { %v1896_v62 = vadd.f32 %v2926_v61, %v1857_v60  ;;  %v1894_v5 = vmul.f32 %v2926_v61, %v1884_v47 }
 0x2fe   :  { %2927 = vrcp.f32 %v1896_v62  ;;  %v1908_v4 = vand.u32 2147483648, %v1896_v62  ;;  %v1906_v7 = vand.u32 2147483647, %v1896_v62  ;;  %vm1902_vm7 = vweird.f32 %v1896_v62 }
 0x2ff   :  { %v1895_v14 = vadd.f32 %v1894_v5, %v1856_v10 }
 0x300   :  { %v1909_v13 = vor.u32 1.1754944e-38, %v1908_v4  ;;  %vm1907_vm9 = vcmp.eq.f32.partialorder %v1906_v7, 8.507059e+37 }
 0x304   :  { %v2928_v63 = vpop.eup %2927 }
 0x305   :  { %v1898_v0 = vmul.f32 %v2928_v63, %v1896_v62  ;;  %vm1903_vm2 = vweird.f32 %v2928_v63 }
 0x306   :  { %vm1904_vm8 = vmor %vm1902_vm7, %vm1903_vm2 }
 0x307   :  { %v1899_v2 = vsub.f32 1.0, %v1898_v0 }
 0x309   :  { %v1900_v6 = vmul.f32 %v2928_v63, %v1899_v2 }
 0x30b   :  { %v1901_v11 = vadd.f32 %v2928_v63, %v1900_v6 }
 0x30d   :  { %v1905_v15 = vsel %vm1904_vm8, %v2928_v63, %v1901_v11 }
 0x30e   :  { %v1910_v48 = vsel %vm1907_vm9, %v1909_v13, %v1905_v15 }
 0x30f   :  { %v1912_v17 = vmul.f32 %v1910_v48, %v1895_v14 }
 0x311   :  { %1913 = vst [vmem:[#allocation10] sm:$0x3] %v1912_v17 }
 0x312   :  { %1924 = dma.vmem_to_hbm [thread:$0]  %s1920_s13, 32, %s1922_s16, [#allocation4]  }
 0x313   :  { %3055 = dma.done.wait [#allocation4], 32  }
 0x314   :  { %3056 = vsyncadd [#allocation4], 4294967264 }
 0x315   :  { %1929 = vsyncpa [#allocation3], 1 }
 0x316   :  { %1930 = vsyncpa [#allocation6], 1 }
 0x317   :  { %1931 = vsyncpa [#allocation9], 1 }
 0x318   :  { %1932 = vsyncpa [#allocation4], 1 }

</bundles_post_ra>
